<compile_context>
chip_gen: v7x
topology: tpu7x:2x2x1
jax: 0.10.0
libtpu: 0.0.40
codegen_flags: <defaults>
</compile_context>

<pallas_src>
import jax
import jax.numpy as jnp
from jax.experimental import pallas as pl
from jax.experimental.pallas import tpu as pltpu

# ---- model dims (small, consistent with the module's __init__) ----
INPUT_SIZE = 4
HIDDEN_SIZE = 32
NUM_LAYERS = 2
OUTPUT_SIZE = 4
BATCH = 2
SEQ_LEN = 8


def _lstm_fc_kernel(x_ref, h0_ref, c0_ref,
                    wih0_ref, whh0_ref, b0_ref,
                    wih1_ref, whh1_ref, b1_ref,
                    wfc_ref, bfc_ref,
                    out_ref):
    """Two-layer LSTM forward (wavefront-interleaved) + fc on the last time step.

    x_ref:   (B, T, I) f32  -- batch_first input, passed untouched (no wrapper relayout)
    h0/c0:   (num_layers, B, H) f32
    wih0:    (I, 4H)   whh0: (H, 4H)   b0: (1, 4H)   (b_ih + b_hh pre-summed)
    wih1:    (H, 4H)   whh1: (H, 4H)   b1: (1, 4H)
    wfc:     (H, O)    bfc:  (1, O)
    out_ref: (B, O)
    """
    B, T, I = x_ref.shape
    H = h0_ref.shape[-1]
    bf16 = jnp.bfloat16
    f32 = jnp.float32

    # ---- hoist everything that is not on the serial dependency chain ----
    wih0b = wih0_ref[...].astype(bf16)                                   # (I, 4H)
    whh0b = whh0_ref[...].astype(bf16)                                   # (H, 4H)
    # Layer-1: fuse input and recurrent weights so each step is ONE matmul.
    w1cat_b = jnp.concatenate([wih1_ref[...], whh1_ref[...]],
                              axis=0).astype(bf16)                       # (2H, 4H)
    wfcb = wfc_ref[...].astype(bf16)                                     # (H, O)
    b1_b = jnp.broadcast_to(b1_ref[...], (B, 4 * H))                     # hoisted broadcast

    # Layer-0 input projection for ALL time steps, fully off the recurrence chain.
    # (B,T,I)->(B*T,I) and (B*T,4H)->(B,T,4H) are leading-dim reshapes (layout no-ops).
    x2d_b = x_ref[...].reshape(B * T, I).astype(bf16)                    # (B*T, I)
    proj0 = (jnp.dot(x2d_b, wih0b, preferred_element_type=f32)
             + jnp.broadcast_to(b0_ref[...], (B * T, 4 * H)))            # (B*T, 4H) f32
    proj0 = proj0.reshape(B, T, 4 * H)                                   # (B, T, 4H)

    def gates_to_hc(gates, c):
        # Two full-width nonlinearities over the whole (B, 4H) vreg,
        # then pick the 32-lane blocks for the elementwise combine.
        s = jax.nn.sigmoid(gates)
        th = jnp.tanh(gates)
        i = s[:, 0 * H:1 * H]
        f = s[:, 1 * H:2 * H]
        g = th[:, 2 * H:3 * H]
        o = s[:, 3 * H:4 * H]
        c_new = f * c + i * g
        h_new = o * jnp.tanh(c_new)
        return h_new, c_new

    # ---- wavefront loop: layer-0 step s and layer-1 step s-1 per iteration ----
    c0 = c0_ref[0]
    c1 = c0_ref[1]
    h0b = h0_ref[0].astype(bf16)      # single bf16 cast per step, reused by both layers
    h1b = h0_ref[1].astype(bf16)
    h0_prev_b = None                  # layer-0 output of the previous iteration (bf16)

    for s in range(T + 1):            # small static trip count -> unrolled
        nh0b = h0b
        if s < T:
            # Layer 0 at time s: one recurrent matmul + gates.
            gates0 = proj0[:, s, :] + jnp.dot(h0b, whh0b,
                                              preferred_element_type=f32)
            h0_new, c0 = gates_to_hc(gates0, c0)
            nh0b = h0_new.astype(bf16)
        if s >= 1:
            # Layer 1 at time s-1: consumes layer-0's output from the previous
            # iteration, so it is independent of this iteration's layer-0 step and
            # its matmul overlaps with it in the MXU pipeline.
            lhs1 = jnp.concatenate([h0_prev_b, h1b], axis=1)             # (B, 2H)
            gates1 = jnp.dot(lhs1, w1cat_b, preferred_element_type=f32) + b1_b
            h1_new, c1 = gates_to_hc(gates1, c1)
            h1b = h1_new.astype(bf16)
        h0_prev_b = nh0b
        h0b = nh0b

    # ---- fc(output)[:, -1, :] == fc(h_T of last layer), bf16 inputs / f32 acc ----
    out_ref[...] = (jnp.dot(h1b, wfcb, preferred_element_type=f32)
                    + bfc_ref[...])


def net_forward(x, params, h0, c0):
    """x: (B, T, I) f32.  Returns pred: (B, OUTPUT_SIZE) f32."""
    B, T, I = x.shape

    vmem = pl.BlockSpec(memory_space=pltpu.MemorySpace.VMEM)
    inputs = (
        x, h0, c0,
        params["wih0"], params["whh0"], params["b0"],
        params["wih1"], params["whh1"], params["b1"],
        params["wfc"], params["bfc"],
    )
    # Single invocation, fully VMEM-resident (total footprint << VMEM on v5e/v6e/v7x);
    # no grid, no scratch, no wrapper-side relayout dispatch.
    return pl.pallas_call(
        _lstm_fc_kernel,
        out_shape=jax.ShapeDtypeStruct((B, OUTPUT_SIZE), jnp.float32),
        in_specs=[vmem] * len(inputs),
        out_specs=vmem,
    )(*inputs)


def net_reference(x, params, h0, c0):
    """Pure-JAX f32 reference (same math, no bf16) for the correctness check."""
    B, T, _ = x.shape
    H = HIDDEN_SIZE

    def cell(x_t, h, c, wih, whh, b):
        gates = x_t @ wih + h @ whh + b
        i = jax.nn.sigmoid(gates[:, 0 * H:1 * H])
        f = jax.nn.sigmoid(gates[:, 1 * H:2 * H])
        g = jnp.tanh(gates[:, 2 * H:3 * H])
        o = jax.nn.sigmoid(gates[:, 3 * H:4 * H])
        c_new = f * c + i * g
        return o * jnp.tanh(c_new), c_new

    h, c = h0[0], c0[0]
    seq = []
    for t in range(T):
        h, c = cell(x[:, t, :], h, c, params["wih0"], params["whh0"], params["b0"])
        seq.append(h)
    h, c = h0[1], c0[1]
    for t in range(T):
        h, c = cell(seq[t], h, c, params["wih1"], params["whh1"], params["b1"])
    return h @ params["wfc"] + params["bfc"]


def init_params(key):
    """Deterministic synthetic parameters with PyTorch-LSTM-style uniform init."""
    H = HIDDEN_SIZE
    k = 1.0 / jnp.sqrt(H)
    keys = jax.random.split(key, 12)

    def u(kk, shape):
        return jax.random.uniform(kk, shape, jnp.float32, -k, k)

    # PyTorch stores weight_ih_l{n} as (4H, in); pre-transpose to (in, 4H).
    wih0 = u(keys[0], (4 * H, INPUT_SIZE)).T
    whh0 = u(keys[1], (4 * H, H)).T
    b0 = (u(keys[2], (4 * H,)) + u(keys[3], (4 * H,))).reshape(1, 4 * H)  # b_ih + b_hh
    wih1 = u(keys[4], (4 * H, H)).T
    whh1 = u(keys[5], (4 * H, H)).T
    b1 = (u(keys[6], (4 * H,)) + u(keys[7], (4 * H,))).reshape(1, 4 * H)
    wfc = u(keys[8], (OUTPUT_SIZE, H)).T          # Linear weight (O, H) -> (H, O)
    bfc = u(keys[9], (OUTPUT_SIZE,)).reshape(1, OUTPUT_SIZE)

    return {
        "wih0": jnp.asarray(wih0), "whh0": jnp.asarray(whh0), "b0": jnp.asarray(b0),
        "wih1": jnp.asarray(wih1), "whh1": jnp.asarray(whh1), "b1": jnp.asarray(b1),
        "wfc": jnp.asarray(wfc), "bfc": jnp.asarray(bfc),
    }


if __name__ == "__main__":
    root = jax.random.PRNGKey(0)
    k_x, k_p, k_h, k_c = jax.random.split(root, 4)

    x = jax.random.normal(k_x, (BATCH, SEQ_LEN, INPUT_SIZE), jnp.float32)
    params = init_params(k_p)

    # TODO(synk): PyTorch's forward draws fresh torch.randn h_0/c_0 each call; here they
    # are deterministic draws from a fixed key (same shapes/distribution).
    h0 = jax.random.normal(k_h, (NUM_LAYERS, BATCH, HIDDEN_SIZE), jnp.float32)
    c0 = jax.random.normal(k_c, (NUM_LAYERS, BATCH, HIDDEN_SIZE), jnp.float32)

    pred = net_forward(x, params, h0, c0)
    jax.block_until_ready(pred)
    assert pred.shape == (BATCH, OUTPUT_SIZE)

    # Check vs. pure-f32 reference (kernel matmuls use bf16 inputs, f32 accumulation).
    ref = net_reference(x, params, h0, c0)
    max_err = float(jnp.max(jnp.abs(pred - ref)))
    assert max_err < 2e-2, f"kernel/reference mismatch: max abs err {max_err}"

    print("KERNEL_OK")
</pallas_src>

<mosaic_0001>
module attributes {stable_mosaic.version = 11 : i64} {
  func.func @_lstm_fc_kernel(%arg0: memref<2x8x4xf32, #tpu.memory_space<vmem>>, %arg1: memref<2x2x32xf32, #tpu.memory_space<vmem>>, %arg2: memref<2x2x32xf32, #tpu.memory_space<vmem>>, %arg3: memref<4x128xf32, #tpu.memory_space<vmem>>, %arg4: memref<32x128xf32, #tpu.memory_space<vmem>>, %arg5: memref<1x128xf32, #tpu.memory_space<vmem>>, %arg6: memref<32x128xf32, #tpu.memory_space<vmem>>, %arg7: memref<32x128xf32, #tpu.memory_space<vmem>>, %arg8: memref<1x128xf32, #tpu.memory_space<vmem>>, %arg9: memref<32x4xf32, #tpu.memory_space<vmem>>, %arg10: memref<1x4xf32, #tpu.memory_space<vmem>>, %arg11: memref<2x4xf32, #tpu.memory_space<vmem>>) attributes {dimension_semantics = [], scalar_prefetch = 0 : i64, scratch_operands = 0 : i64, tpu.core_type = #tpu.core_type<tc>} {
    %c0 = arith.constant 0 : index
    %c0_0 = arith.constant 0 : index
    %0 = vector.load %arg3[%c0, %c0_0] : memref<4x128xf32, #tpu.memory_space<vmem>>, vector<4x128xf32>
    %1 = arith.truncf %0 : vector<4x128xf32> to vector<4x128xbf16>
    %c0_1 = arith.constant 0 : index
    %c0_2 = arith.constant 0 : index
    %2 = vector.load %arg4[%c0_1, %c0_2] : memref<32x128xf32, #tpu.memory_space<vmem>>, vector<32x128xf32>
    %3 = arith.truncf %2 : vector<32x128xf32> to vector<32x128xbf16>
    %c0_3 = arith.constant 0 : index
    %c0_4 = arith.constant 0 : index
    %4 = vector.load %arg6[%c0_3, %c0_4] : memref<32x128xf32, #tpu.memory_space<vmem>>, vector<32x128xf32>
    %c0_5 = arith.constant 0 : index
    %c0_6 = arith.constant 0 : index
    %5 = vector.load %arg7[%c0_5, %c0_6] : memref<32x128xf32, #tpu.memory_space<vmem>>, vector<32x128xf32>
    %6 = tpu.concatenate %4, %5 in 0 : vector<32x128xf32>, vector<32x128xf32> -> vector<64x128xf32>
    %7 = arith.truncf %6 : vector<64x128xf32> to vector<64x128xbf16>
    %c0_7 = arith.constant 0 : index
    %c0_8 = arith.constant 0 : index
    %8 = vector.load %arg9[%c0_7, %c0_8] : memref<32x4xf32, #tpu.memory_space<vmem>>, vector<32x4xf32>
    %9 = arith.truncf %8 : vector<32x4xf32> to vector<32x4xbf16>
    %c0_9 = arith.constant 0 : index
    %c0_10 = arith.constant 0 : index
    %10 = vector.load %arg8[%c0_9, %c0_10] : memref<1x128xf32, #tpu.memory_space<vmem>>, vector<1x128xf32>
    %11 = vector.shape_cast %10 : vector<1x128xf32> to vector<1x128xf32>
    %12 = vector.broadcast %11 : vector<1x128xf32> to vector<2x128xf32>
    %c0_11 = arith.constant 0 : index
    %c0_12 = arith.constant 0 : index
    %c0_13 = arith.constant 0 : index
    %13 = vector.load %arg0[%c0_11, %c0_12, %c0_13] : memref<2x8x4xf32, #tpu.memory_space<vmem>>, vector<2x8x4xf32>
    %14 = vector.shape_cast %13 : vector<2x8x4xf32> to vector<16x4xf32>
    %15 = arith.truncf %14 : vector<16x4xf32> to vector<16x4xbf16>
    %cst = arith.constant dense<0.000000e+00> : vector<16x128xf32>
    %16 = tpu.matmul %15, %1, %cst {dimension_numbers = #tpu.dot_dimension_numbers<[1], [0], [0], [1], [0, 0, 1, 1], [], []>} : vector<16x4xbf16>, vector<4x128xbf16>, vector<16x128xf32> -> vector<16x128xf32>
    %c0_14 = arith.constant 0 : index
    %c0_15 = arith.constant 0 : index
    %17 = vector.load %arg5[%c0_14, %c0_15] : memref<1x128xf32, #tpu.memory_space<vmem>>, vector<1x128xf32>
    %18 = vector.shape_cast %17 : vector<1x128xf32> to vector<1x128xf32>
    %19 = vector.broadcast %18 : vector<1x128xf32> to vector<16x128xf32>
    %20 = arith.addf %16, %19 : vector<16x128xf32>
    %21 = vector.shape_cast %20 : vector<16x128xf32> to vector<2x8x128xf32>
    %c0_16 = arith.constant 0 : index
    %c0_17 = arith.constant 0 : index
    %c0_18 = arith.constant 0 : index
    %22 = vector.load %arg2[%c0_16, %c0_17, %c0_18] : memref<2x2x32xf32, #tpu.memory_space<vmem>>, vector<1x2x32xf32>
    %23 = vector.shape_cast %22 : vector<1x2x32xf32> to vector<2x32xf32>
    %c1 = arith.constant 1 : index
    %c0_19 = arith.constant 0 : index
    %c0_20 = arith.constant 0 : index
    %24 = vector.load %arg2[%c1, %c0_19, %c0_20] : memref<2x2x32xf32, #tpu.memory_space<vmem>>, vector<1x2x32xf32>
    %25 = vector.shape_cast %24 : vector<1x2x32xf32> to vector<2x32xf32>
    %c0_21 = arith.constant 0 : index
    %c0_22 = arith.constant 0 : index
    %c0_23 = arith.constant 0 : index
    %26 = vector.load %arg1[%c0_21, %c0_22, %c0_23] : memref<2x2x32xf32, #tpu.memory_space<vmem>>, vector<1x2x32xf32>
    %27 = vector.shape_cast %26 : vector<1x2x32xf32> to vector<2x32xf32>
    %28 = arith.truncf %27 : vector<2x32xf32> to vector<2x32xbf16>
    %c1_24 = arith.constant 1 : index
    %c0_25 = arith.constant 0 : index
    %c0_26 = arith.constant 0 : index
    %29 = vector.load %arg1[%c1_24, %c0_25, %c0_26] : memref<2x2x32xf32, #tpu.memory_space<vmem>>, vector<1x2x32xf32>
    %30 = vector.shape_cast %29 : vector<1x2x32xf32> to vector<2x32xf32>
    %31 = arith.truncf %30 : vector<2x32xf32> to vector<2x32xbf16>
    %32 = vector.extract_strided_slice %21 {offsets = [0, 0, 0], sizes = [2, 1, 128], strides = [1, 1, 1]} : vector<2x8x128xf32> to vector<2x1x128xf32>
    %33 = vector.shape_cast %32 : vector<2x1x128xf32> to vector<2x128xf32>
    %cst_27 = arith.constant dense<0.000000e+00> : vector<2x128xf32>
    %34 = tpu.matmul %28, %3, %cst_27 {dimension_numbers = #tpu.dot_dimension_numbers<[1], [0], [0], [1], [0, 0, 1, 1], [], []>} : vector<2x32xbf16>, vector<32x128xbf16>, vector<2x128xf32> -> vector<2x128xf32>
    %35 = arith.addf %33, %34 : vector<2x128xf32>
    %36 = arith.negf %35 : vector<2x128xf32>
    %37 = math.exp %36 : vector<2x128xf32>
    %cst_28 = arith.constant 1.000000e+00 : f32
    %38 = vector.broadcast %cst_28 : f32 to vector<2x128xf32>
    %39 = arith.addf %38, %37 : vector<2x128xf32>
    %40 = arith.divf %38, %39 : vector<2x128xf32>
    %41 = math.tanh %35 : vector<2x128xf32>
    %42 = vector.extract_strided_slice %40 {offsets = [0, 0], sizes = [2, 32], strides = [1, 1]} : vector<2x128xf32> to vector<2x32xf32>
    %43 = vector.extract_strided_slice %40 {offsets = [0, 32], sizes = [2, 32], strides = [1, 1]} : vector<2x128xf32> to vector<2x32xf32>
    %44 = vector.extract_strided_slice %41 {offsets = [0, 64], sizes = [2, 32], strides = [1, 1]} : vector<2x128xf32> to vector<2x32xf32>
    %45 = vector.extract_strided_slice %40 {offsets = [0, 96], sizes = [2, 32], strides = [1, 1]} : vector<2x128xf32> to vector<2x32xf32>
    %46 = arith.mulf %43, %23 : vector<2x32xf32>
    %47 = arith.mulf %42, %44 : vector<2x32xf32>
    %48 = arith.addf %46, %47 : vector<2x32xf32>
    %49 = math.tanh %48 : vector<2x32xf32>
    %50 = arith.mulf %45, %49 : vector<2x32xf32>
    %51 = arith.truncf %50 : vector<2x32xf32> to vector<2x32xbf16>
    %52 = vector.extract_strided_slice %21 {offsets = [0, 1, 0], sizes = [2, 1, 128], strides = [1, 1, 1]} : vector<2x8x128xf32> to vector<2x1x128xf32>
    %53 = vector.shape_cast %52 : vector<2x1x128xf32> to vector<2x128xf32>
    %cst_29 = arith.constant dense<0.000000e+00> : vector<2x128xf32>
    %54 = tpu.matmul %51, %3, %cst_29 {dimension_numbers = #tpu.dot_dimension_numbers<[1], [0], [0], [1], [0, 0, 1, 1], [], []>} : vector<2x32xbf16>, vector<32x128xbf16>, vector<2x128xf32> -> vector<2x128xf32>
    %55 = arith.addf %53, %54 : vector<2x128xf32>
    %56 = arith.negf %55 : vector<2x128xf32>
    %57 = math.exp %56 : vector<2x128xf32>
    %cst_30 = arith.constant 1.000000e+00 : f32
    %58 = vector.broadcast %cst_30 : f32 to vector<2x128xf32>
    %59 = arith.addf %58, %57 : vector<2x128xf32>
    %60 = arith.divf %58, %59 : vector<2x128xf32>
    %61 = math.tanh %55 : vector<2x128xf32>
    %62 = vector.extract_strided_slice %60 {offsets = [0, 0], sizes = [2, 32], strides = [1, 1]} : vector<2x128xf32> to vector<2x32xf32>
    %63 = vector.extract_strided_slice %60 {offsets = [0, 32], sizes = [2, 32], strides = [1, 1]} : vector<2x128xf32> to vector<2x32xf32>
    %64 = vector.extract_strided_slice %61 {offsets = [0, 64], sizes = [2, 32], strides = [1, 1]} : vector<2x128xf32> to vector<2x32xf32>
    %65 = vector.extract_strided_slice %60 {offsets = [0, 96], sizes = [2, 32], strides = [1, 1]} : vector<2x128xf32> to vector<2x32xf32>
    %66 = arith.mulf %63, %48 : vector<2x32xf32>
    %67 = arith.mulf %62, %64 : vector<2x32xf32>
    %68 = arith.addf %66, %67 : vector<2x32xf32>
    %69 = math.tanh %68 : vector<2x32xf32>
    %70 = arith.mulf %65, %69 : vector<2x32xf32>
    %71 = arith.truncf %70 : vector<2x32xf32> to vector<2x32xbf16>
    %72 = tpu.concatenate %51, %31 in 1 : vector<2x32xbf16>, vector<2x32xbf16> -> vector<2x64xbf16>
    %cst_31 = arith.constant dense<0.000000e+00> : vector<2x128xf32>
    %73 = tpu.matmul %72, %7, %cst_31 {dimension_numbers = #tpu.dot_dimension_numbers<[1], [0], [0], [1], [0, 0, 1, 1], [], []>} : vector<2x64xbf16>, vector<64x128xbf16>, vector<2x128xf32> -> vector<2x128xf32>
    %74 = arith.addf %73, %12 : vector<2x128xf32>
    %75 = arith.negf %74 : vector<2x128xf32>
    %76 = math.exp %75 : vector<2x128xf32>
    %cst_32 = arith.constant 1.000000e+00 : f32
    %77 = vector.broadcast %cst_32 : f32 to vector<2x128xf32>
    %78 = arith.addf %77, %76 : vector<2x128xf32>
    %79 = arith.divf %77, %78 : vector<2x128xf32>
    %80 = math.tanh %74 : vector<2x128xf32>
    %81 = vector.extract_strided_slice %79 {offsets = [0, 0], sizes = [2, 32], strides = [1, 1]} : vector<2x128xf32> to vector<2x32xf32>
    %82 = vector.extract_strided_slice %79 {offsets = [0, 32], sizes = [2, 32], strides = [1, 1]} : vector<2x128xf32> to vector<2x32xf32>
    %83 = vector.extract_strided_slice %80 {offsets = [0, 64], sizes = [2, 32], strides = [1, 1]} : vector<2x128xf32> to vector<2x32xf32>
    %84 = vector.extract_strided_slice %79 {offsets = [0, 96], sizes = [2, 32], strides = [1, 1]} : vector<2x128xf32> to vector<2x32xf32>
    %85 = arith.mulf %82, %25 : vector<2x32xf32>
    %86 = arith.mulf %81, %83 : vector<2x32xf32>
    %87 = arith.addf %85, %86 : vector<2x32xf32>
    %88 = math.tanh %87 : vector<2x32xf32>
    %89 = arith.mulf %84, %88 : vector<2x32xf32>
    %90 = arith.truncf %89 : vector<2x32xf32> to vector<2x32xbf16>
    %91 = vector.extract_strided_slice %21 {offsets = [0, 2, 0], sizes = [2, 1, 128], strides = [1, 1, 1]} : vector<2x8x128xf32> to vector<2x1x128xf32>
    %92 = vector.shape_cast %91 : vector<2x1x128xf32> to vector<2x128xf32>
    %cst_33 = arith.constant dense<0.000000e+00> : vector<2x128xf32>
    %93 = tpu.matmul %71, %3, %cst_33 {dimension_numbers = #tpu.dot_dimension_numbers<[1], [0], [0], [1], [0, 0, 1, 1], [], []>} : vector<2x32xbf16>, vector<32x128xbf16>, vector<2x128xf32> -> vector<2x128xf32>
    %94 = arith.addf %92, %93 : vector<2x128xf32>
    %95 = arith.negf %94 : vector<2x128xf32>
    %96 = math.exp %95 : vector<2x128xf32>
    %cst_34 = arith.constant 1.000000e+00 : f32
    %97 = vector.broadcast %cst_34 : f32 to vector<2x128xf32>
    %98 = arith.addf %97, %96 : vector<2x128xf32>
    %99 = arith.divf %97, %98 : vector<2x128xf32>
    %100 = math.tanh %94 : vector<2x128xf32>
    %101 = vector.extract_strided_slice %99 {offsets = [0, 0], sizes = [2, 32], strides = [1, 1]} : vector<2x128xf32> to vector<2x32xf32>
    %102 = vector.extract_strided_slice %99 {offsets = [0, 32], sizes = [2, 32], strides = [1, 1]} : vector<2x128xf32> to vector<2x32xf32>
    %103 = vector.extract_strided_slice %100 {offsets = [0, 64], sizes = [2, 32], strides = [1, 1]} : vector<2x128xf32> to vector<2x32xf32>
    %104 = vector.extract_strided_slice %99 {offsets = [0, 96], sizes = [2, 32], strides = [1, 1]} : vector<2x128xf32> to vector<2x32xf32>
    %105 = arith.mulf %102, %68 : vector<2x32xf32>
    %106 = arith.mulf %101, %103 : vector<2x32xf32>
    %107 = arith.addf %105, %106 : vector<2x32xf32>
    %108 = math.tanh %107 : vector<2x32xf32>
    %109 = arith.mulf %104, %108 : vector<2x32xf32>
    %110 = arith.truncf %109 : vector<2x32xf32> to vector<2x32xbf16>
    %111 = tpu.concatenate %71, %90 in 1 : vector<2x32xbf16>, vector<2x32xbf16> -> vector<2x64xbf16>
    %cst_35 = arith.constant dense<0.000000e+00> : vector<2x128xf32>
    %112 = tpu.matmul %111, %7, %cst_35 {dimension_numbers = #tpu.dot_dimension_numbers<[1], [0], [0], [1], [0, 0, 1, 1], [], []>} : vector<2x64xbf16>, vector<64x128xbf16>, vector<2x128xf32> -> vector<2x128xf32>
    %113 = arith.addf %112, %12 : vector<2x128xf32>
    %114 = arith.negf %113 : vector<2x128xf32>
    %115 = math.exp %114 : vector<2x128xf32>
    %cst_36 = arith.constant 1.000000e+00 : f32
    %116 = vector.broadcast %cst_36 : f32 to vector<2x128xf32>
    %117 = arith.addf %116, %115 : vector<2x128xf32>
    %118 = arith.divf %116, %117 : vector<2x128xf32>
    %119 = math.tanh %113 : vector<2x128xf32>
    %120 = vector.extract_strided_slice %118 {offsets = [0, 0], sizes = [2, 32], strides = [1, 1]} : vector<2x128xf32> to vector<2x32xf32>
    %121 = vector.extract_strided_slice %118 {offsets = [0, 32], sizes = [2, 32], strides = [1, 1]} : vector<2x128xf32> to vector<2x32xf32>
    %122 = vector.extract_strided_slice %119 {offsets = [0, 64], sizes = [2, 32], strides = [1, 1]} : vector<2x128xf32> to vector<2x32xf32>
    %123 = vector.extract_strided_slice %118 {offsets = [0, 96], sizes = [2, 32], strides = [1, 1]} : vector<2x128xf32> to vector<2x32xf32>
    %124 = arith.mulf %121, %87 : vector<2x32xf32>
    %125 = arith.mulf %120, %122 : vector<2x32xf32>
    %126 = arith.addf %124, %125 : vector<2x32xf32>
    %127 = math.tanh %126 : vector<2x32xf32>
    %128 = arith.mulf %123, %127 : vector<2x32xf32>
    %129 = arith.truncf %128 : vector<2x32xf32> to vector<2x32xbf16>
    %130 = vector.extract_strided_slice %21 {offsets = [0, 3, 0], sizes = [2, 1, 128], strides = [1, 1, 1]} : vector<2x8x128xf32> to vector<2x1x128xf32>
    %131 = vector.shape_cast %130 : vector<2x1x128xf32> to vector<2x128xf32>
    %cst_37 = arith.constant dense<0.000000e+00> : vector<2x128xf32>
    %132 = tpu.matmul %110, %3, %cst_37 {dimension_numbers = #tpu.dot_dimension_numbers<[1], [0], [0], [1], [0, 0, 1, 1], [], []>} : vector<2x32xbf16>, vector<32x128xbf16>, vector<2x128xf32> -> vector<2x128xf32>
    %133 = arith.addf %131, %132 : vector<2x128xf32>
    %134 = arith.negf %133 : vector<2x128xf32>
    %135 = math.exp %134 : vector<2x128xf32>
    %cst_38 = arith.constant 1.000000e+00 : f32
    %136 = vector.broadcast %cst_38 : f32 to vector<2x128xf32>
    %137 = arith.addf %136, %135 : vector<2x128xf32>
    %138 = arith.divf %136, %137 : vector<2x128xf32>
    %139 = math.tanh %133 : vector<2x128xf32>
    %140 = vector.extract_strided_slice %138 {offsets = [0, 0], sizes = [2, 32], strides = [1, 1]} : vector<2x128xf32> to vector<2x32xf32>
    %141 = vector.extract_strided_slice %138 {offsets = [0, 32], sizes = [2, 32], strides = [1, 1]} : vector<2x128xf32> to vector<2x32xf32>
    %142 = vector.extract_strided_slice %139 {offsets = [0, 64], sizes = [2, 32], strides = [1, 1]} : vector<2x128xf32> to vector<2x32xf32>
    %143 = vector.extract_strided_slice %138 {offsets = [0, 96], sizes = [2, 32], strides = [1, 1]} : vector<2x128xf32> to vector<2x32xf32>
    %144 = arith.mulf %141, %107 : vector<2x32xf32>
    %145 = arith.mulf %140, %142 : vector<2x32xf32>
    %146 = arith.addf %144, %145 : vector<2x32xf32>
    %147 = math.tanh %146 : vector<2x32xf32>
    %148 = arith.mulf %143, %147 : vector<2x32xf32>
    %149 = arith.truncf %148 : vector<2x32xf32> to vector<2x32xbf16>
    %150 = tpu.concatenate %110, %129 in 1 : vector<2x32xbf16>, vector<2x32xbf16> -> vector<2x64xbf16>
    %cst_39 = arith.constant dense<0.000000e+00> : vector<2x128xf32>
    %151 = tpu.matmul %150, %7, %cst_39 {dimension_numbers = #tpu.dot_dimension_numbers<[1], [0], [0], [1], [0, 0, 1, 1], [], []>} : vector<2x64xbf16>, vector<64x128xbf16>, vector<2x128xf32> -> vector<2x128xf32>
    %152 = arith.addf %151, %12 : vector<2x128xf32>
    %153 = arith.negf %152 : vector<2x128xf32>
    %154 = math.exp %153 : vector<2x128xf32>
    %cst_40 = arith.constant 1.000000e+00 : f32
    %155 = vector.broadcast %cst_40 : f32 to vector<2x128xf32>
    %156 = arith.addf %155, %154 : vector<2x128xf32>
    %157 = arith.divf %155, %156 : vector<2x128xf32>
    %158 = math.tanh %152 : vector<2x128xf32>
    %159 = vector.extract_strided_slice %157 {offsets = [0, 0], sizes = [2, 32], strides = [1, 1]} : vector<2x128xf32> to vector<2x32xf32>
    %160 = vector.extract_strided_slice %157 {offsets = [0, 32], sizes = [2, 32], strides = [1, 1]} : vector<2x128xf32> to vector<2x32xf32>
    %161 = vector.extract_strided_slice %158 {offsets = [0, 64], sizes = [2, 32], strides = [1, 1]} : vector<2x128xf32> to vector<2x32xf32>
    %162 = vector.extract_strided_slice %157 {offsets = [0, 96], sizes = [2, 32], strides = [1, 1]} : vector<2x128xf32> to vector<2x32xf32>
    %163 = arith.mulf %160, %126 : vector<2x32xf32>
    %164 = arith.mulf %159, %161 : vector<2x32xf32>
    %165 = arith.addf %163, %164 : vector<2x32xf32>
    %166 = math.tanh %165 : vector<2x32xf32>
    %167 = arith.mulf %162, %166 : vector<2x32xf32>
    %168 = arith.truncf %167 : vector<2x32xf32> to vector<2x32xbf16>
    %169 = vector.extract_strided_slice %21 {offsets = [0, 4, 0], sizes = [2, 1, 128], strides = [1, 1, 1]} : vector<2x8x128xf32> to vector<2x1x128xf32>
    %170 = vector.shape_cast %169 : vector<2x1x128xf32> to vector<2x128xf32>
    %cst_41 = arith.constant dense<0.000000e+00> : vector<2x128xf32>
    %171 = tpu.matmul %149, %3, %cst_41 {dimension_numbers = #tpu.dot_dimension_numbers<[1], [0], [0], [1], [0, 0, 1, 1], [], []>} : vector<2x32xbf16>, vector<32x128xbf16>, vector<2x128xf32> -> vector<2x128xf32>
    %172 = arith.addf %170, %171 : vector<2x128xf32>
    %173 = arith.negf %172 : vector<2x128xf32>
    %174 = math.exp %173 : vector<2x128xf32>
    %cst_42 = arith.constant 1.000000e+00 : f32
    %175 = vector.broadcast %cst_42 : f32 to vector<2x128xf32>
    %176 = arith.addf %175, %174 : vector<2x128xf32>
    %177 = arith.divf %175, %176 : vector<2x128xf32>
    %178 = math.tanh %172 : vector<2x128xf32>
    %179 = vector.extract_strided_slice %177 {offsets = [0, 0], sizes = [2, 32], strides = [1, 1]} : vector<2x128xf32> to vector<2x32xf32>
    %180 = vector.extract_strided_slice %177 {offsets = [0, 32], sizes = [2, 32], strides = [1, 1]} : vector<2x128xf32> to vector<2x32xf32>
    %181 = vector.extract_strided_slice %178 {offsets = [0, 64], sizes = [2, 32], strides = [1, 1]} : vector<2x128xf32> to vector<2x32xf32>
    %182 = vector.extract_strided_slice %177 {offsets = [0, 96], sizes = [2, 32], strides = [1, 1]} : vector<2x128xf32> to vector<2x32xf32>
    %183 = arith.mulf %180, %146 : vector<2x32xf32>
    %184 = arith.mulf %179, %181 : vector<2x32xf32>
    %185 = arith.addf %183, %184 : vector<2x32xf32>
    %186 = math.tanh %185 : vector<2x32xf32>
    %187 = arith.mulf %182, %186 : vector<2x32xf32>
    %188 = arith.truncf %187 : vector<2x32xf32> to vector<2x32xbf16>
    %189 = tpu.concatenate %149, %168 in 1 : vector<2x32xbf16>, vector<2x32xbf16> -> vector<2x64xbf16>
    %cst_43 = arith.constant dense<0.000000e+00> : vector<2x128xf32>
    %190 = tpu.matmul %189, %7, %cst_43 {dimension_numbers = #tpu.dot_dimension_numbers<[1], [0], [0], [1], [0, 0, 1, 1], [], []>} : vector<2x64xbf16>, vector<64x128xbf16>, vector<2x128xf32> -> vector<2x128xf32>
    %191 = arith.addf %190, %12 : vector<2x128xf32>
    %192 = arith.negf %191 : vector<2x128xf32>
    %193 = math.exp %192 : vector<2x128xf32>
    %cst_44 = arith.constant 1.000000e+00 : f32
    %194 = vector.broadcast %cst_44 : f32 to vector<2x128xf32>
    %195 = arith.addf %194, %193 : vector<2x128xf32>
    %196 = arith.divf %194, %195 : vector<2x128xf32>
    %197 = math.tanh %191 : vector<2x128xf32>
    %198 = vector.extract_strided_slice %196 {offsets = [0, 0], sizes = [2, 32], strides = [1, 1]} : vector<2x128xf32> to vector<2x32xf32>
    %199 = vector.extract_strided_slice %196 {offsets = [0, 32], sizes = [2, 32], strides = [1, 1]} : vector<2x128xf32> to vector<2x32xf32>
    %200 = vector.extract_strided_slice %197 {offsets = [0, 64], sizes = [2, 32], strides = [1, 1]} : vector<2x128xf32> to vector<2x32xf32>
    %201 = vector.extract_strided_slice %196 {offsets = [0, 96], sizes = [2, 32], strides = [1, 1]} : vector<2x128xf32> to vector<2x32xf32>
    %202 = arith.mulf %199, %165 : vector<2x32xf32>
    %203 = arith.mulf %198, %200 : vector<2x32xf32>
    %204 = arith.addf %202, %203 : vector<2x32xf32>
    %205 = math.tanh %204 : vector<2x32xf32>
    %206 = arith.mulf %201, %205 : vector<2x32xf32>
    %207 = arith.truncf %206 : vector<2x32xf32> to vector<2x32xbf16>
    %208 = vector.extract_strided_slice %21 {offsets = [0, 5, 0], sizes = [2, 1, 128], strides = [1, 1, 1]} : vector<2x8x128xf32> to vector<2x1x128xf32>
    %209 = vector.shape_cast %208 : vector<2x1x128xf32> to vector<2x128xf32>
    %cst_45 = arith.constant dense<0.000000e+00> : vector<2x128xf32>
    %210 = tpu.matmul %188, %3, %cst_45 {dimension_numbers = #tpu.dot_dimension_numbers<[1], [0], [0], [1], [0, 0, 1, 1], [], []>} : vector<2x32xbf16>, vector<32x128xbf16>, vector<2x128xf32> -> vector<2x128xf32>
    %211 = arith.addf %209, %210 : vector<2x128xf32>
    %212 = arith.negf %211 : vector<2x128xf32>
    %213 = math.exp %212 : vector<2x128xf32>
    %cst_46 = arith.constant 1.000000e+00 : f32
    %214 = vector.broadcast %cst_46 : f32 to vector<2x128xf32>
    %215 = arith.addf %214, %213 : vector<2x128xf32>
    %216 = arith.divf %214, %215 : vector<2x128xf32>
    %217 = math.tanh %211 : vector<2x128xf32>
    %218 = vector.extract_strided_slice %216 {offsets = [0, 0], sizes = [2, 32], strides = [1, 1]} : vector<2x128xf32> to vector<2x32xf32>
    %219 = vector.extract_strided_slice %216 {offsets = [0, 32], sizes = [2, 32], strides = [1, 1]} : vector<2x128xf32> to vector<2x32xf32>
    %220 = vector.extract_strided_slice %217 {offsets = [0, 64], sizes = [2, 32], strides = [1, 1]} : vector<2x128xf32> to vector<2x32xf32>
    %221 = vector.extract_strided_slice %216 {offsets = [0, 96], sizes = [2, 32], strides = [1, 1]} : vector<2x128xf32> to vector<2x32xf32>
    %222 = arith.mulf %219, %185 : vector<2x32xf32>
    %223 = arith.mulf %218, %220 : vector<2x32xf32>
    %224 = arith.addf %222, %223 : vector<2x32xf32>
    %225 = math.tanh %224 : vector<2x32xf32>
    %226 = arith.mulf %221, %225 : vector<2x32xf32>
    %227 = arith.truncf %226 : vector<2x32xf32> to vector<2x32xbf16>
    %228 = tpu.concatenate %188, %207 in 1 : vector<2x32xbf16>, vector<2x32xbf16> -> vector<2x64xbf16>
    %cst_47 = arith.constant dense<0.000000e+00> : vector<2x128xf32>
    %229 = tpu.matmul %228, %7, %cst_47 {dimension_numbers = #tpu.dot_dimension_numbers<[1], [0], [0], [1], [0, 0, 1, 1], [], []>} : vector<2x64xbf16>, vector<64x128xbf16>, vector<2x128xf32> -> vector<2x128xf32>
    %230 = arith.addf %229, %12 : vector<2x128xf32>
    %231 = arith.negf %230 : vector<2x128xf32>
    %232 = math.exp %231 : vector<2x128xf32>
    %cst_48 = arith.constant 1.000000e+00 : f32
    %233 = vector.broadcast %cst_48 : f32 to vector<2x128xf32>
    %234 = arith.addf %233, %232 : vector<2x128xf32>
    %235 = arith.divf %233, %234 : vector<2x128xf32>
    %236 = math.tanh %230 : vector<2x128xf32>
    %237 = vector.extract_strided_slice %235 {offsets = [0, 0], sizes = [2, 32], strides = [1, 1]} : vector<2x128xf32> to vector<2x32xf32>
    %238 = vector.extract_strided_slice %235 {offsets = [0, 32], sizes = [2, 32], strides = [1, 1]} : vector<2x128xf32> to vector<2x32xf32>
    %239 = vector.extract_strided_slice %236 {offsets = [0, 64], sizes = [2, 32], strides = [1, 1]} : vector<2x128xf32> to vector<2x32xf32>
    %240 = vector.extract_strided_slice %235 {offsets = [0, 96], sizes = [2, 32], strides = [1, 1]} : vector<2x128xf32> to vector<2x32xf32>
    %241 = arith.mulf %238, %204 : vector<2x32xf32>
    %242 = arith.mulf %237, %239 : vector<2x32xf32>
    %243 = arith.addf %241, %242 : vector<2x32xf32>
    %244 = math.tanh %243 : vector<2x32xf32>
    %245 = arith.mulf %240, %244 : vector<2x32xf32>
    %246 = arith.truncf %245 : vector<2x32xf32> to vector<2x32xbf16>
    %247 = vector.extract_strided_slice %21 {offsets = [0, 6, 0], sizes = [2, 1, 128], strides = [1, 1, 1]} : vector<2x8x128xf32> to vector<2x1x128xf32>
    %248 = vector.shape_cast %247 : vector<2x1x128xf32> to vector<2x128xf32>
    %cst_49 = arith.constant dense<0.000000e+00> : vector<2x128xf32>
    %249 = tpu.matmul %227, %3, %cst_49 {dimension_numbers = #tpu.dot_dimension_numbers<[1], [0], [0], [1], [0, 0, 1, 1], [], []>} : vector<2x32xbf16>, vector<32x128xbf16>, vector<2x128xf32> -> vector<2x128xf32>
    %250 = arith.addf %248, %249 : vector<2x128xf32>
    %251 = arith.negf %250 : vector<2x128xf32>
    %252 = math.exp %251 : vector<2x128xf32>
    %cst_50 = arith.constant 1.000000e+00 : f32
    %253 = vector.broadcast %cst_50 : f32 to vector<2x128xf32>
    %254 = arith.addf %253, %252 : vector<2x128xf32>
    %255 = arith.divf %253, %254 : vector<2x128xf32>
    %256 = math.tanh %250 : vector<2x128xf32>
    %257 = vector.extract_strided_slice %255 {offsets = [0, 0], sizes = [2, 32], strides = [1, 1]} : vector<2x128xf32> to vector<2x32xf32>
    %258 = vector.extract_strided_slice %255 {offsets = [0, 32], sizes = [2, 32], strides = [1, 1]} : vector<2x128xf32> to vector<2x32xf32>
    %259 = vector.extract_strided_slice %256 {offsets = [0, 64], sizes = [2, 32], strides = [1, 1]} : vector<2x128xf32> to vector<2x32xf32>
    %260 = vector.extract_strided_slice %255 {offsets = [0, 96], sizes = [2, 32], strides = [1, 1]} : vector<2x128xf32> to vector<2x32xf32>
    %261 = arith.mulf %258, %224 : vector<2x32xf32>
    %262 = arith.mulf %257, %259 : vector<2x32xf32>
    %263 = arith.addf %261, %262 : vector<2x32xf32>
    %264 = math.tanh %263 : vector<2x32xf32>
    %265 = arith.mulf %260, %264 : vector<2x32xf32>
    %266 = arith.truncf %265 : vector<2x32xf32> to vector<2x32xbf16>
    %267 = tpu.concatenate %227, %246 in 1 : vector<2x32xbf16>, vector<2x32xbf16> -> vector<2x64xbf16>
    %cst_51 = arith.constant dense<0.000000e+00> : vector<2x128xf32>
    %268 = tpu.matmul %267, %7, %cst_51 {dimension_numbers = #tpu.dot_dimension_numbers<[1], [0], [0], [1], [0, 0, 1, 1], [], []>} : vector<2x64xbf16>, vector<64x128xbf16>, vector<2x128xf32> -> vector<2x128xf32>
    %269 = arith.addf %268, %12 : vector<2x128xf32>
    %270 = arith.negf %269 : vector<2x128xf32>
    %271 = math.exp %270 : vector<2x128xf32>
    %cst_52 = arith.constant 1.000000e+00 : f32
    %272 = vector.broadcast %cst_52 : f32 to vector<2x128xf32>
    %273 = arith.addf %272, %271 : vector<2x128xf32>
    %274 = arith.divf %272, %273 : vector<2x128xf32>
    %275 = math.tanh %269 : vector<2x128xf32>
    %276 = vector.extract_strided_slice %274 {offsets = [0, 0], sizes = [2, 32], strides = [1, 1]} : vector<2x128xf32> to vector<2x32xf32>
    %277 = vector.extract_strided_slice %274 {offsets = [0, 32], sizes = [2, 32], strides = [1, 1]} : vector<2x128xf32> to vector<2x32xf32>
    %278 = vector.extract_strided_slice %275 {offsets = [0, 64], sizes = [2, 32], strides = [1, 1]} : vector<2x128xf32> to vector<2x32xf32>
    %279 = vector.extract_strided_slice %274 {offsets = [0, 96], sizes = [2, 32], strides = [1, 1]} : vector<2x128xf32> to vector<2x32xf32>
    %280 = arith.mulf %277, %243 : vector<2x32xf32>
    %281 = arith.mulf %276, %278 : vector<2x32xf32>
    %282 = arith.addf %280, %281 : vector<2x32xf32>
    %283 = math.tanh %282 : vector<2x32xf32>
    %284 = arith.mulf %279, %283 : vector<2x32xf32>
    %285 = arith.truncf %284 : vector<2x32xf32> to vector<2x32xbf16>
    %286 = vector.extract_strided_slice %21 {offsets = [0, 7, 0], sizes = [2, 1, 128], strides = [1, 1, 1]} : vector<2x8x128xf32> to vector<2x1x128xf32>
    %287 = vector.shape_cast %286 : vector<2x1x128xf32> to vector<2x128xf32>
    %cst_53 = arith.constant dense<0.000000e+00> : vector<2x128xf32>
    %288 = tpu.matmul %266, %3, %cst_53 {dimension_numbers = #tpu.dot_dimension_numbers<[1], [0], [0], [1], [0, 0, 1, 1], [], []>} : vector<2x32xbf16>, vector<32x128xbf16>, vector<2x128xf32> -> vector<2x128xf32>
    %289 = arith.addf %287, %288 : vector<2x128xf32>
    %290 = arith.negf %289 : vector<2x128xf32>
    %291 = math.exp %290 : vector<2x128xf32>
    %cst_54 = arith.constant 1.000000e+00 : f32
    %292 = vector.broadcast %cst_54 : f32 to vector<2x128xf32>
    %293 = arith.addf %292, %291 : vector<2x128xf32>
    %294 = arith.divf %292, %293 : vector<2x128xf32>
    %295 = math.tanh %289 : vector<2x128xf32>
    %296 = vector.extract_strided_slice %294 {offsets = [0, 0], sizes = [2, 32], strides = [1, 1]} : vector<2x128xf32> to vector<2x32xf32>
    %297 = vector.extract_strided_slice %294 {offsets = [0, 32], sizes = [2, 32], strides = [1, 1]} : vector<2x128xf32> to vector<2x32xf32>
    %298 = vector.extract_strided_slice %295 {offsets = [0, 64], sizes = [2, 32], strides = [1, 1]} : vector<2x128xf32> to vector<2x32xf32>
    %299 = vector.extract_strided_slice %294 {offsets = [0, 96], sizes = [2, 32], strides = [1, 1]} : vector<2x128xf32> to vector<2x32xf32>
    %300 = arith.mulf %297, %263 : vector<2x32xf32>
    %301 = arith.mulf %296, %298 : vector<2x32xf32>
    %302 = arith.addf %300, %301 : vector<2x32xf32>
    %303 = math.tanh %302 : vector<2x32xf32>
    %304 = arith.mulf %299, %303 : vector<2x32xf32>
    %305 = arith.truncf %304 : vector<2x32xf32> to vector<2x32xbf16>
    %306 = tpu.concatenate %266, %285 in 1 : vector<2x32xbf16>, vector<2x32xbf16> -> vector<2x64xbf16>
    %cst_55 = arith.constant dense<0.000000e+00> : vector<2x128xf32>
    %307 = tpu.matmul %306, %7, %cst_55 {dimension_numbers = #tpu.dot_dimension_numbers<[1], [0], [0], [1], [0, 0, 1, 1], [], []>} : vector<2x64xbf16>, vector<64x128xbf16>, vector<2x128xf32> -> vector<2x128xf32>
    %308 = arith.addf %307, %12 : vector<2x128xf32>
    %309 = arith.negf %308 : vector<2x128xf32>
    %310 = math.exp %309 : vector<2x128xf32>
    %cst_56 = arith.constant 1.000000e+00 : f32
    %311 = vector.broadcast %cst_56 : f32 to vector<2x128xf32>
    %312 = arith.addf %311, %310 : vector<2x128xf32>
    %313 = arith.divf %311, %312 : vector<2x128xf32>
    %314 = math.tanh %308 : vector<2x128xf32>
    %315 = vector.extract_strided_slice %313 {offsets = [0, 0], sizes = [2, 32], strides = [1, 1]} : vector<2x128xf32> to vector<2x32xf32>
    %316 = vector.extract_strided_slice %313 {offsets = [0, 32], sizes = [2, 32], strides = [1, 1]} : vector<2x128xf32> to vector<2x32xf32>
    %317 = vector.extract_strided_slice %314 {offsets = [0, 64], sizes = [2, 32], strides = [1, 1]} : vector<2x128xf32> to vector<2x32xf32>
    %318 = vector.extract_strided_slice %313 {offsets = [0, 96], sizes = [2, 32], strides = [1, 1]} : vector<2x128xf32> to vector<2x32xf32>
    %319 = arith.mulf %316, %282 : vector<2x32xf32>
    %320 = arith.mulf %315, %317 : vector<2x32xf32>
    %321 = arith.addf %319, %320 : vector<2x32xf32>
    %322 = math.tanh %321 : vector<2x32xf32>
    %323 = arith.mulf %318, %322 : vector<2x32xf32>
    %324 = arith.truncf %323 : vector<2x32xf32> to vector<2x32xbf16>
    %325 = tpu.concatenate %305, %324 in 1 : vector<2x32xbf16>, vector<2x32xbf16> -> vector<2x64xbf16>
    %cst_57 = arith.constant dense<0.000000e+00> : vector<2x128xf32>
    %326 = tpu.matmul %325, %7, %cst_57 {dimension_numbers = #tpu.dot_dimension_numbers<[1], [0], [0], [1], [0, 0, 1, 1], [], []>} : vector<2x64xbf16>, vector<64x128xbf16>, vector<2x128xf32> -> vector<2x128xf32>
    %327 = arith.addf %326, %12 : vector<2x128xf32>
    %328 = arith.negf %327 : vector<2x128xf32>
    %329 = math.exp %328 : vector<2x128xf32>
    %cst_58 = arith.constant 1.000000e+00 : f32
    %330 = vector.broadcast %cst_58 : f32 to vector<2x128xf32>
    %331 = arith.addf %330, %329 : vector<2x128xf32>
    %332 = arith.divf %330, %331 : vector<2x128xf32>
    %333 = math.tanh %327 : vector<2x128xf32>
    %334 = vector.extract_strided_slice %332 {offsets = [0, 0], sizes = [2, 32], strides = [1, 1]} : vector<2x128xf32> to vector<2x32xf32>
    %335 = vector.extract_strided_slice %332 {offsets = [0, 32], sizes = [2, 32], strides = [1, 1]} : vector<2x128xf32> to vector<2x32xf32>
    %336 = vector.extract_strided_slice %333 {offsets = [0, 64], sizes = [2, 32], strides = [1, 1]} : vector<2x128xf32> to vector<2x32xf32>
    %337 = vector.extract_strided_slice %332 {offsets = [0, 96], sizes = [2, 32], strides = [1, 1]} : vector<2x128xf32> to vector<2x32xf32>
    %338 = arith.mulf %335, %321 : vector<2x32xf32>
    %339 = arith.mulf %334, %336 : vector<2x32xf32>
    %340 = arith.addf %338, %339 : vector<2x32xf32>
    %341 = math.tanh %340 : vector<2x32xf32>
    %342 = arith.mulf %337, %341 : vector<2x32xf32>
    %343 = arith.truncf %342 : vector<2x32xf32> to vector<2x32xbf16>
    %cst_59 = arith.constant dense<0.000000e+00> : vector<2x4xf32>
    %344 = tpu.matmul %343, %9, %cst_59 {dimension_numbers = #tpu.dot_dimension_numbers<[1], [0], [0], [1], [0, 0, 1, 1], [], []>} : vector<2x32xbf16>, vector<32x4xbf16>, vector<2x4xf32> -> vector<2x4xf32>
    %c0_60 = arith.constant 0 : index
    %c0_61 = arith.constant 0 : index
    %345 = vector.load %arg10[%c0_60, %c0_61] : memref<1x4xf32, #tpu.memory_space<vmem>>, vector<1x4xf32>
    %346 = vector.broadcast %345 : vector<1x4xf32> to vector<2x4xf32>
    %347 = arith.addf %344, %346 : vector<2x4xf32>
    %c0_62 = arith.constant 0 : index
    %c0_63 = arith.constant 0 : index
    %348 = vector.load %arg11[%c0_62, %c0_63] : memref<2x4xf32, #tpu.memory_space<vmem>>, vector<2x4xf32>
    tpu.vector_store %arg11[%c0_62, %c0_63], %347 {strides = array<i32>} : memref<2x4xf32, #tpu.memory_space<vmem>>, vector<2x4xf32>,
    return
  }
}

</mosaic_0001>

<bundles_post_ra>
// kernel: tpu_custom_call.1
= control target key start
LH: loop header
LB: loop body
LE: loop exit
PB: predicated region body
PF: predicated region fallthrough
CT: control target
= control target key end

     0   :  { %16 = vsyncpa [#allocation3], 0  ;;  %s3089_s0 = inlined_call_operand.vmem [shape: f32[2,8,4], index: 0, kind: input, shape index: {}]   ;;  %s3090_s1 = inlined_call_operand.hbm [shape: f32[2,2,32], index: 1, kind: input, shape index: {}]   ;;  %s3091_s2 = inlined_call_operand.hbm [shape: f32[2,2,32], index: 2, kind: input, shape index: {}]   ;;  %s3092_s3 = inlined_call_operand.hbm [shape: f32[4,128], index: 3, kind: input, shape index: {}]   ;;  %s3093_s4 = inlined_call_operand.vmem [shape: f32[32,128], index: 4, kind: input, shape index: {}]   ;;  %s3094_s5 = inlined_call_operand.vmem [shape: f32[1,128], index: 5, kind: input, shape index: {}]   ;;  %s3095_s6 = inlined_call_operand.vmem [shape: f32[32,128], index: 6, kind: input, shape index: {}]   ;;  %s3096_s7 = inlined_call_operand.hbm [shape: f32[32,128], index: 7, kind: input, shape index: {}]   ;;  %s3097_s8 = inlined_call_operand.vmem [shape: f32[1,128], index: 8, kind: input, shape index: {}]   ;;  %s3098_s9 = inlined_call_operand.vmem [shape: f32[32,4], index: 9, kind: input, shape index: {}]   ;;  %s3099_s10 = inlined_call_operand.vmem [shape: f32[1,4], index: 10, kind: input, shape index: {}]   ;;  %s3100_s11 = inlined_call_operand.hbm [shape: f32[2,4], index: 11, kind: output, shape index: {}]  }
   0x1   :  { %17 = vsyncpa [#allocation6], 0 }
   0x2   :  { %18 = vsyncpa [#allocation9], 0 }
   0x3   :  { %19 = vsyncpa [#allocation4], 0  ;;  %s2496_s17 = smov [#allocation5]   ;;  %s2497_s19 = smov [#allocation2]  }
   0x4   :  { %s39_s18 = sshll.u32 %s2496_s17, 4  ;;  %s27_s20 = sshll.u32 %s2497_s19, 4  ;;  %s40_s18 = int_to_ptr.vmem [resolvable:$true] %s39_s18  ;;  %s2568_s20 = int_to_ptr.vmem [resolvable:$true] %s27_s20 }
   0x5   :  { %s2378_s23 = scalar_lea.hbm %s3091_s2, 64 }
   0x6   :  { %p2379_p0 = scmp.ne.s32.totalorder %s3091_s2, %s2378_s23  ;;  %p2382_p1 = scmp.lt.u32.totalorder %s2378_s23, %s3091_s2 }
   0x8   :  { %p2384_p2 = pnand %p2382_p1, %p2379_p0 }
   0xa   :  { %2387 = shalt.err (!%p2384_p2)
}
   0xb   :  { %s2388_s28 = scalar_lea.vmem %s40_s18, 64  ;;  %p2393_p4 = scmp.lt.s32.totalorder %s40_s18, %s40_s18 }
   0xc   :  { %p2389_p3 = scmp.ne.s32.totalorder %s40_s18, %s2388_s28  ;;  %p2394_p5 = scmp.lt.s32.totalorder %s2388_s28, %s2388_s28 }
   0xe   :  { %p2395_p6 = por %p2394_p5, %p2393_p4 }
  0x10   :  { %p2396_p7 = pnand %p2395_p6, %p2389_p3 }
  0x12   :  { %2399 = shalt.err (!%p2396_p7)
}
  0x13   :  { %s2498_s29 = smov 32   ;;  %s2499_s30 = smov 2  }
  0x14   :  { %45 = dma.hbm_to_vmem [thread:$0]  %s3091_s2, 64, %s40_s18, [#allocation6], %s2498_s29, %s2498_s29, %s2499_s30  }
  0x15   :  { %s2400_s16 = scalar_lea.hbm %s3090_s1, 64 }
  0x16   :  { %p2401_p8 = scmp.ne.s32.totalorder %s3090_s1, %s2400_s16  ;;  %p2404_p9 = scmp.lt.u32.totalorder %s2400_s16, %s3090_s1 }
  0x18   :  { %p2406_p10 = pnand %p2404_p9, %p2401_p8 }
  0x1a   :  { %2409 = shalt.err (!%p2406_p10)
}
  0x1b   :  { %s2410_s23 = scalar_lea.vmem %s2568_s20, 64  ;;  %p2415_p12 = scmp.lt.s32.totalorder %s2568_s20, %s2568_s20 }
  0x1c   :  { %p2411_p11 = scmp.ne.s32.totalorder %s2568_s20, %s2410_s23  ;;  %p2416_p13 = scmp.lt.s32.totalorder %s2410_s23, %s2410_s23 }
  0x1e   :  { %p2417_p0 = por %p2416_p13, %p2415_p12 }
  0x20   :  { %p2418_p1 = pnand %p2417_p0, %p2411_p11 }
  0x22   :  { %2421 = shalt.err (!%p2418_p1)
}
  0x23   :  { %33 = dma.hbm_to_vmem [thread:$0]  %s3090_s1, 64, %s2568_s20, [#allocation3], %s2498_s29, %s2498_s29, %s2499_s30  }
  0x24   :  { %s2500_s24 = smov [#allocation7]   ;;  %s2501_s26 = smov [#allocation8]  }
  0x25   :  { %s52_s25 = sshll.u32 %s2500_s24, 4  ;;  %s67_s27 = sshll.u32 %s2501_s26, 4  ;;  %s53_s25 = int_to_ptr.vmem [resolvable:$true] %s52_s25  ;;  %s2603_s27 = int_to_ptr.vmem [resolvable:$true] %s67_s27 }
  0x26   :  { %s2422_s13 = scalar_lea.hbm %s3092_s3, 64 }
  0x27   :  { %p2423_p2 = scmp.ne.s32.totalorder %s3092_s3, %s2422_s13  ;;  %p2426_p3 = scmp.lt.u32.totalorder %s2422_s13, %s3092_s3 }
  0x29   :  { %p2428_p4 = pnand %p2426_p3, %p2423_p2 }
  0x2b   :  { %2431 = shalt.err (!%p2428_p4)
}
  0x2c   :  { %s2432_s1 = scalar_lea.vmem %s53_s25, 64  ;;  %p2437_p6 = scmp.lt.s32.totalorder %s53_s25, %s53_s25 }
  0x2d   :  { %p2433_p5 = scmp.ne.s32.totalorder %s53_s25, %s2432_s1  ;;  %p2438_p7 = scmp.lt.s32.totalorder %s2432_s1, %s2432_s1 }
  0x2f   :  { %p2439_p8 = por %p2438_p7, %p2437_p6 }
  0x31   :  { %p2440_p9 = pnand %p2439_p8, %p2433_p5 }
  0x33   :  { %2443 = shalt.err (!%p2440_p9)
}
  0x34   :  { %55 = dma.hbm_to_vmem [thread:$0]  %s3092_s3, 64, %s53_s25, [#allocation6]  }
  0x35   :  { %s2444_s22 = scalar_lea.hbm %s3096_s7, 512 }
  0x36   :  { %p2445_p10 = scmp.ne.s32.totalorder %s3096_s7, %s2444_s22  ;;  %p2448_p11 = scmp.lt.u32.totalorder %s2444_s22, %s3096_s7 }
  0x38   :  { %p2450_p12 = pnand %p2448_p11, %p2445_p10 }
  0x3a   :  { %2453 = shalt.err (!%p2450_p12)
}
  0x3b   :  { %s2454_s26 = scalar_lea.vmem %s2603_s27, 512  ;;  %p2459_p0 = scmp.lt.s32.totalorder %s2603_s27, %s2603_s27 }
  0x3c   :  { %p2455_p13 = scmp.ne.s32.totalorder %s2603_s27, %s2454_s26  ;;  %p2460_p1 = scmp.lt.s32.totalorder %s2454_s26, %s2454_s26 }
  0x3e   :  { %p2461_p2 = por %p2460_p1, %p2459_p0 }
  0x40   :  { %p2462_p3 = pnand %p2461_p2, %p2455_p13 }
  0x42   :  { %2465 = shalt.err (!%p2462_p3)
}
  0x43   :  { %s2502_s3 = smov 128   ;;  %s2503_s25 = smov 8  }
  0x44   :  { %73 = dma.hbm_to_vmem [thread:$0]  %s3096_s7, 512, %s2603_s27, [#allocation9], %s2502_s3, %s2502_s3, %s2503_s25  }
  0x45   :  { %2488 = dma.done.wait [#allocation3], 64  }
  0x46   :  { %2489 = vsyncadd [#allocation3], 4294967232 }
  0x47   :  { %2490 = dma.done.wait [#allocation6], 128  }
  0x48   :  { %2491 = vsyncadd [#allocation6], 4294967168 }
  0x49   :  { %2492 = dma.done.wait [#allocation9], 512  }
  0x4a   :  { %2493 = vsyncadd [#allocation9], 4294966784  ;;  %v2504_v0 = vmov 0.0   ;;  %vm2505_vm0 = vmmov 0   ;;  %v95_v1 = vld [vmem:[%s3093_s4] sm:$0xff]  ;;  %v96_v2 = vld [vmem:[%s3093_s4 + $0x8] sm:$0xff] }
  0x4b   :  { %2005 = vmatprep.subr.bf16.mxu1 %v2504_v0  ;;  %1999 = vmatprep.subr.bf16.mxu0 %v2504_v0  ;;  %v93_v3 = vld [vmem:[#allocation7] sm:$0xf]  ;;  %vm140_vm1 = vcmask 1041408   ;;  %v2646_v4 = vpack.c.bf16 %v96_v2, %v95_v1  ;;  %v126_v6 = vld [vmem:[%s3089_s0] sm:$0xff]  ;;  %v97_v8 = vld [vmem:[%s3093_s4 + $0x10] sm:$0xff]  ;;  %vm136_vm2 = vcmask 31744  }
  0x4c   :  { %2001 = vmatprep.mubr.msk.bf16.mxu0 %vm2505_vm0, %v2504_v0  ;;  %2009 = vmatprep.mubr.msk.bf16.mxu1 %vm2505_vm0, %v2504_v0  ;;  %v94_v5 = vpack.c.bf16 %v93_v3, %v93_v3  ;;  %v127_v7 = vld [vmem:[%s3089_s0 + $0x8] sm:$0xff]  ;;  %v98_v9 = vld [vmem:[%s3093_s4 + $0x18] sm:$0xff]  ;;  %v185_v10 = vld [vmem:[#allocation5] sm:$0x3]  ;;  %vm193_vm3 = vcmask 261120   ;;  %vm306_vm4 = vcmask 1041409  }
  0x4d   :  { %2006 = vmatpush3.bf16.msra.mxu1 %v2646_v4  ;;  %v128_v12 = vpack.c.bf16 %v127_v7, %v126_v6  ;;  %v2661_v13 = vpack.c.bf16 %v98_v9, %v97_v8  ;;  %v188_v14 = vld [vmem:[#allocation2] sm:$0x3]  ;;  %v258_v15 = vrot.slane %v185_v10, 1  ;;  %v102_v55 = vld [vmem:[%s3095_s6 + $0x8] sm:$0xff]  ;;  %v103_v56 = vld [vmem:[%s3095_s6 + $0x10] sm:$0xff]  ;;  %vm421_vm5 = vcmask 523264  }
  0x4e   :  { %v142_v11 = vsel %vm140_vm1, %v94_v5, 0  ;;  %2007 = vmatprep.subr.bf16.mxu1 %v2504_v0  ;;  %v189_v16 = vpack.c.bf16 %v188_v14, %v188_v14  ;;  %v1886_v17 = vld [vmem:[%s3094_s5] ss:$0 sm:$0xff]  ;;  %s2506_s5 = smov 64   ;;  %v191_v57 = vld [vmem:[#allocation2 + $0x2] sm:$0x3] }
  0x4f   :  { %2000 = vmatpush3.bf16.msra.mxu0 %v142_v11  ;;  %261 = vrot.lane.b32.xlu1 %v258_v15, %s2498_s29  ;;  %v101_v54 = vld [vmem:[%s3095_s6] sm:$0xff]  ;;  %v104_v59 = vld [vmem:[%s3095_s6 + $0x18] sm:$0xff]  ;;  %v192_v62 = vpack.c.bf16 %v191_v57, %v191_v57  ;;  %v105_v63 = vld [vmem:[#allocation8] sm:$0xff]  ;;  %vm609_vm6 = vcmask 1042434   ;;  %vm817_vm7 = vcmask 1043459   ;;  %vm1016_vm8 = vcmask 1044484  }
  0x50   :  { %2013 = vmatprep.subr.bf16.mxu0 %v2504_v0  ;;  %v2707_v58 = vpack.c.bf16 %v102_v55, %v101_v54  ;;  %v2713_v61 = vpack.c.bf16 %v104_v59, %v103_v56  ;;  %v106_v1 = vld [vmem:[#allocation8 + $0x8] sm:$0xff]  ;;  %v107_v3 = vld [vmem:[#allocation8 + $0x10] sm:$0xff]  ;;  %v108_v5 = vld [vmem:[#allocation8 + $0x18] sm:$0xff]  ;;  %vm1226_vm9 = vcmask 1045509   ;;  %vm1425_vm10 = vcmask 1046534  }
  0x51   :  { %2008 = vmatpush3.bf16.msra.mxu1 %v2661_v13  ;;  %v2718_v2 = vpack.c.bf16 %v106_v1, %v105_v63  ;;  %v2723_v6 = vpack.c.bf16 %v108_v5, %v107_v3  ;;  %vm1635_vm11 = vcmask 1047559   ;;  %vm1866_vm12 = vcmask 25600  }
  0x52   :  { %2002 = vmatmul.mubr.msk.bf16.vlgmr.msra.gmra.mrb[0].mxu0 %vm136_vm2, %v128_v12  ;;  %2021 = vmatprep.subr.bf16.mxu1 %v2504_v0 }
  0x53   :  { %2014 = vmatpush3.bf16.msra.mxu0 %v2646_v4  ;;  %259 = vrot.lane.b32.xlu1 %v185_v10, %s2498_s29 }
  0x54   :  { %2015 = vmatprep.subr.bf16.mxu0 %v2504_v0  ;;  %2010 = vmatmul.mubr.msk.bf16.vlgmr.msra.gmra.mrb[0].mxu1 %vm193_vm3, %v189_v16 }
  0x55   :  { %2017 = vmatprep.mubr.msk.bf16.mxu0 %vm2505_vm0, %v2504_v0  ;;  %2029 = vmatprep.mubr.msk.bf16.mxu1 %vm2505_vm0, %v2504_v0 }
  0x56   :  { %2022 = vmatpush3.bf16.msra.mxu1 %v2707_v58 }
  0x57   :  { %2016 = vmatpush3.bf16.msra.mxu0 %v2661_v13  ;;  %2023 = vmatprep.subr.bf16.mxu1 %v2504_v0 }
  0x58   :  { %2033 = vmatprep.subr.bf16.mxu0 %v2504_v0 }
  0x5a   :  { %2024 = vmatpush3.bf16.msra.mxu1 %v2713_v61 }
  0x5b   :  { %2025 = vmatprep.subr.bf16.mxu1 %v2504_v0 }
  0x5e   :  { %2026 = vmatpush3.bf16.msra.mxu1 %v2718_v2 }
  0x5f   :  { %2027 = vmatprep.subr.bf16.mxu1 %v2504_v0 }
  0x62   :  { %2028 = vmatpush3.bf16.msra.mxu1 %v2723_v6 }
  0x63   :  { %2053 = vmatprep.subr.bf16.mxu1 %v2504_v0 }
  0xc1   :  { %v262_v45 = vpop.permute.xlu1 %261 }
  0xc5   :  { %v260_v47 = vpop.permute.xlu1 %259 }
 0x125   :  { %v178_v18 = vpop.f32.mrb[0].mxu0 }
 0x126   :  { %v2003_v19 = vpop.f32.mrb[1].mxu0  ;;  %v2683_v26 = vadd.f32 %v1886_v17, %v178_v18 }
 0x127   :  { %v181_v20 = vpop.f32.mrb[2].mxu0  ;;  %v231_v23 = vpop.f32.mrb[0].mxu1 }
 0x128   :  { %v2681_v21 = vadd.f32 %v1886_v17, %v181_v20  ;;  %v2004_v22 = vpop.f32.mrb[3].mxu0  ;;  %v238_v24 = vrot.slane %v231_v23, 1  ;;  %v2011_v25 = vpop.f32.mrb[1].mxu1  ;;  %v241_v30 = vadd.f32 %v231_v23, %v2683_v26 }
 0x129   :  { %v234_v27 = vpop.f32.mrb[2].mxu1 }
 0x12a   :  { %v242_v28 = vadd.f32 %v238_v24, %v2681_v21  ;;  %v2012_v29 = vpop.f32.mrb[3].mxu1  ;;  %v1889_v34 = vmul.f32 -1.442695, %v241_v30 }
 0x12c   :  { %2185 = vtanh.f32 %v242_v28  ;;  %v1890_v33 = vmul.f32 -1.442695, %v242_v28 }
 0x12d   :  { %2187 = vtanh.f32 %v241_v30 }
 0x12e   :  { %2189 = vpow2.f32 %v1890_v33 }
 0x12f   :  { %2191 = vpow2.f32 %v1889_v34 }
 0x136   :  { %v2186_v31 = vpop.eup %2185 }
 0x137   :  { %271 = vrot.lane.b32.xlu0 %v2186_v31, %s2506_s5  ;;  %v2188_v32 = vpop.eup %2187 }
 0x138   :  { %v2190_v35 = vpop.eup %2189 }
 0x139   :  { %v250_v36 = vadd.f32 1.0, %v2190_v35  ;;  %v2192_v37 = vpop.eup %2191 }
 0x13a   :  { %v249_v38 = vadd.f32 1.0, %v2192_v37 }
 0x13b   :  { %269 = vrot.lane.b32.xlu0 %v2188_v32, %s2506_s5  ;;  %2193 = vrcp.f32 %v250_v36  ;;  %v2750_v32 = vld [vmem:[%s3097_s8] ss:$0 sm:$0xff] }
 0x13c   :  { %2195 = vrcp.f32 %v249_v38 }
 0x145   :  { %v2194_v39 = vpop.eup %2193 }
 0x146   :  { %v2196_v42 = vpop.eup %2195  ;;  %v266_v46 = vmul.f32 %v2194_v39, %v262_v45 }
 0x147   :  { %v265_v50 = vmul.f32 %v2196_v42, %v260_v47 }
 0x1a9   :  { %v272_v40 = vpop.permute.xlu0 %271 }
 0x1aa   :  { %v276_v41 = vmul.f32 %v2194_v39, %v272_v40 }
 0x1ac   :  { %281 = vrot.lane.b32.xlu0 %v276_v41, %s2498_s29 }
 0x1ad   :  { %v270_v43 = vpop.permute.xlu0 %269 }
 0x1ae   :  { %v275_v44 = vmul.f32 %v2196_v42, %v270_v43 }
 0x1b0   :  { %279 = vrot.lane.b32.xlu1 %v275_v44, %s2498_s29 }
 0x21e   :  { %v282_v48 = vpop.permute.xlu0 %281 }
 0x21f   :  { %v2691_v49 = vadd.f32 %v282_v48, %v266_v46 }
 0x221   :  { %2197 = vtanh.f32 %v2691_v49  ;;  %v377_v63 = vrot.slane %v2691_v49, 7 }
 0x222   :  { %v280_v51 = vpop.permute.xlu1 %279 }
 0x223   :  { %v2694_v52 = vadd.f32 %v280_v51, %v265_v50 }
 0x225   :  { %2199 = vtanh.f32 %v2694_v52  ;;  %v376_v3 = vrot.slane %v2694_v52, 7 }
 0x22b   :  { %v2198_v53 = vpop.eup %2197 }
 0x22c   :  { %293 = vrot.lane.b32.xlu0 %v2198_v53, %s2506_s5 }
 0x22f   :  { %v2200_v60 = vpop.eup %2199 }
 0x230   :  { %291 = vrot.lane.b32.xlu1 %v2200_v60, %s2506_s5  ;;  %v187_v60 = vld [vmem:[#allocation5 + $0x2] sm:$0x3] }
 0x234   :  { %417 = vrot.lane.b32.xlu1 %v192_v62, %s2498_s29 }
 0x29e   :  { %v294_v7 = vpop.permute.xlu0 %293 }
 0x29f   :  { %v298_v8 = vmul.f32 %v2194_v39, %v294_v7 }
 0x2a1   :  { %v300_v9 = vpack.c.bf16 %v298_v8, %v298_v8 }
 0x2a2   :  { %v292_v10 = vpop.permute.xlu1 %291 }
 0x2a3   :  { %v304_v11 = vunpack.c.l.b16 %v300_v9  ;;  %v297_v12 = vmul.f32 %v2196_v42, %v292_v10 }
 0x2a5   :  { %v299_v14 = vpack.c.bf16 %v297_v12, %v297_v12  ;;  %v305_v15 = vrot.slane %v304_v11, 7 }
 0x2a6   :  { %v418_v19 = vpop.permute.xlu1 %417 }
 0x2a7   :  { %v303_v16 = vunpack.c.l.b16 %v299_v14 }
 0x2a9   :  { %v307_v17 = vsel %vm306_vm4, %v305_v15, %v303_v16 }
 0x2aa   :  { %v308_v18 = vpack.c.b16 %v307_v17, %v307_v17 }
 0x2ac   :  { %309 = vrot.lane.b32.xlu0 %v308_v18, %s2498_s29 }
 0x31e   :  { %v310_v20 = vpop.permute.xlu0 %309 }
 0x31f   :  { %v420_v22 = vsel %vm193_vm3, %v310_v20, %v418_v19  ;;  %2018 = vmatmul.mubr.msk.bf16.vlgmr.msra.gmra.mrb[4].mxu0 %vm193_vm3, %v310_v20 }
 0x320   :  { %2030 = vmatmul.mubr.msk.bf16.vlgmr.msra.gmra.mrb[4].mxu1 %vm421_vm5, %v420_v22  ;;  %2034 = vmatpush3.bf16.msra.mxu0 %v2646_v4 }
 0x321   :  { %2035 = vmatprep.subr.bf16.mxu0 %v2504_v0  ;;  %2037 = vmatprep.mubr.msk.bf16.mxu0 %vm2505_vm0, %v2504_v0 }
 0x322   :  { %2054 = vmatpush3.bf16.msra.mxu1 %v2646_v4  ;;  %2057 = vmatprep.mubr.msk.bf16.mxu1 %vm2505_vm0, %v2504_v0 }
 0x323   :  { %2055 = vmatprep.subr.bf16.mxu1 %v2504_v0 }
 0x324   :  { %2036 = vmatpush3.bf16.msra.mxu0 %v2661_v13 }
 0x325   :  { %2041 = vmatprep.subr.bf16.mxu0 %v2504_v0 }
 0x326   :  { %2056 = vmatpush3.bf16.msra.mxu1 %v2661_v13 }
 0x327   :  { %2061 = vmatprep.subr.bf16.mxu1 %v2504_v0 }
 0x3f2   :  { %v348_v23 = vpop.f32.mrb[4].mxu0 }
 0x3f3   :  { %v355_v24 = vrot.slane %v348_v23, 7  ;;  %v359_v25 = vadd.f32 %v348_v23, %v2681_v21  ;;  %v2019_v27 = vpop.f32.mrb[5].mxu0  ;;  %v458_v28 = vpop.f32.mrb[4].mxu1 }
 0x3f4   :  { %v351_v29 = vpop.f32.mrb[6].mxu0  ;;  %v2031_v30 = vpop.f32.mrb[5].mxu1  ;;  %v459_v36 = vadd.f32 %v2750_v32, %v458_v28 }
 0x3f5   :  { %v358_v31 = vadd.f32 %v355_v24, %v2683_v26  ;;  %2201 = vtanh.f32 %v359_v25  ;;  %v2020_v33 = vpop.f32.mrb[7].mxu0  ;;  %v461_v34 = vpop.f32.mrb[6].mxu1  ;;  %v1893_v40 = vmul.f32 -1.442695, %v359_v25 }
 0x3f6   :  { %v2032_v35 = vpop.f32.mrb[7].mxu1  ;;  %v1895_v42 = vmul.f32 -1.442695, %v459_v36 }
 0x3f7   :  { %2203 = vtanh.f32 %v358_v31  ;;  %v1892_v41 = vmul.f32 -1.442695, %v358_v31 }
 0x3f8   :  { %2205 = vtanh.f32 %v459_v36 }
 0x3f9   :  { %2207 = vpow2.f32 %v1893_v40 }
 0x3fa   :  { %2209 = vpow2.f32 %v1892_v41 }
 0x3fb   :  { %2211 = vpow2.f32 %v1895_v42 }
 0x3ff   :  { %v2202_v37 = vpop.eup %2201 }
 0x400   :  { %386 = vrot.lane.b32.xlu1 %v2202_v37, %s2506_s5 }
 0x401   :  { %v2204_v38 = vpop.eup %2203 }
 0x402   :  { %384 = vrot.lane.b32.xlu0 %v2204_v38, %s2506_s5  ;;  %v2206_v39 = vpop.eup %2205 }
 0x403   :  { %v2208_v43 = vpop.eup %2207 }
 0x404   :  { %v2210_v44 = vpop.eup %2209  ;;  %v367_v45 = vadd.f32 1.0, %v2208_v43 }
 0x405   :  { %v366_v46 = vadd.f32 1.0, %v2210_v44  ;;  %v2212_v47 = vpop.eup %2211 }
 0x406   :  { %477 = vrot.lane.b32.xlu0 %v2206_v39, %s2506_s5  ;;  %2213 = vrcp.f32 %v367_v45  ;;  %v467_v48 = vadd.f32 1.0, %v2212_v47 }
 0x407   :  { %2215 = vrcp.f32 %v366_v46 }
 0x408   :  { %2217 = vrcp.f32 %v467_v48 }
 0x410   :  { %v2214_v50 = vpop.eup %2213 }
 0x411   :  { %v2216_v54 = vpop.eup %2215  ;;  %v381_v1 = vmul.f32 %v2214_v50, %v377_v63 }
 0x412   :  { %v2218_v57 = vpop.eup %2217  ;;  %v380_v8 = vmul.f32 %v2216_v54, %v376_v3 }
 0x472   :  { %v387_v51 = vpop.permute.xlu1 %386 }
 0x473   :  { %v391_v53 = vmul.f32 %v2214_v50, %v387_v51 }
 0x474   :  { %v385_v55 = vpop.permute.xlu0 %384 }
 0x475   :  { %396 = vrot.lane.b32.xlu0 %v391_v53, %s2498_s29  ;;  %v390_v56 = vmul.f32 %v2216_v54, %v385_v55 }
 0x477   :  { %394 = vrot.lane.b32.xlu1 %v390_v56, %s2498_s29 }
 0x478   :  { %v478_v59 = vpop.permute.xlu0 %477 }
 0x479   :  { %v480_v62 = vmul.f32 %v2218_v57, %v478_v59 }
 0x47b   :  { %482 = vrot.lane.b32.xlu0 %v480_v62, %s2498_s29  ;;  %472 = vrot.lane.b32.xlu1 %v187_v60, %s2498_s29 }
 0x4e7   :  { %v397_v5 = vpop.permute.xlu0 %396 }
 0x4e8   :  { %v2762_v7 = vadd.f32 %v397_v5, %v381_v1 }
 0x4e9   :  { %v395_v9 = vpop.permute.xlu1 %394 }
 0x4ea   :  { %2219 = vtanh.f32 %v2762_v7  ;;  %v2765_v10 = vadd.f32 %v395_v9, %v380_v8 }
 0x4ec   :  { %2221 = vtanh.f32 %v2765_v10 }
 0x4ed   :  { %v473_v11 = vpop.permute.xlu1 %472  ;;  %v483_v14 = vpop.permute.xlu0 %482 }
 0x4ee   :  { %v475_v12 = vmul.f32 %v2218_v57, %v473_v11 }
 0x4f0   :  { %v2768_v15 = vadd.f32 %v483_v14, %v475_v12 }
 0x4f2   :  { %2223 = vtanh.f32 %v2768_v15 }
 0x4f4   :  { %v2220_v49 = vpop.eup %2219 }
 0x4f5   :  { %408 = vrot.lane.b32.xlu0 %v2220_v49, %s2506_s5 }
 0x4f6   :  { %v2222_v52 = vpop.eup %2221 }
 0x4f7   :  { %406 = vrot.lane.b32.xlu1 %v2222_v52, %s2506_s5 }
 0x4fc   :  { %v2224_v16 = vpop.eup %2223 }
 0x4fd   :  { %488 = vrot.lane.b32.xlu1 %v2224_v16, %s2506_s5 }
 0x567   :  { %v409_v17 = vpop.permute.xlu0 %408 }
 0x568   :  { %v413_v18 = vmul.f32 %v2214_v50, %v409_v17 }
 0x569   :  { %v407_v20 = vpop.permute.xlu1 %406 }
 0x56a   :  { %v415_v19 = vpack.c.bf16 %v413_v18, %v413_v18  ;;  %v412_v22 = vmul.f32 %v2216_v54, %v407_v20 }
 0x56c   :  { %v496_v23 = vunpack.c.l.b16 %v415_v19  ;;  %v414_v24 = vpack.c.bf16 %v412_v22, %v412_v22 }
 0x56e   :  { %v608_v25 = vrot.slane %v496_v23, 7  ;;  %v495_v27 = vunpack.c.l.b16 %v414_v24 }
 0x56f   :  { %v489_v28 = vpop.permute.xlu1 %488 }
 0x570   :  { %v497_v29 = vrot.slane %v495_v27, 1  ;;  %v491_v30 = vmul.f32 %v2218_v57, %v489_v28  ;;  %v610_v31 = vsel %vm609_vm6, %v608_v25, %v495_v27 }
 0x571   :  { %v611_v33 = vpack.c.b16 %v610_v31, %v610_v31  ;;  %v568_v31 = vrot.slane %v2765_v10, 7 }
 0x572   :  { %v492_v34 = vpack.c.bf16 %v491_v30, %v491_v30  ;;  %v498_v35 = vsel %vm306_vm4, %v496_v23, %v497_v29 }
 0x573   :  { %612 = vrot.lane.b32.xlu1 %v611_v33, %s2498_s29  ;;  %v499_v36 = vpack.c.b16 %v498_v35, %v498_v35  ;;  %v569_v33 = vrot.slane %v2762_v7, 7 }
 0x574   :  { %v615_v37 = vshrl.u32 %v492_v34, 16  ;;  %v618_v39 = vshll.u32 %v492_v34, 16 }
 0x575   :  { %500 = vrot.lane.b32.xlu0 %v499_v36, %s2498_s29 }
 0x576   :  { %v617_v38 = vrot.slane %v615_v37, 7 }
 0x578   :  { %v620_v40 = vor.u32 %v618_v39, %v617_v38 }
 0x57a   :  { %621 = vrot.lane.b32.xlu0 %v620_v40, %s2506_s5 }
 0x5e5   :  { %v613_v42 = vpop.permute.xlu1 %612 }
 0x5e7   :  { %v501_v41 = vpop.permute.xlu0 %500 }
 0x5e8   :  { %2038 = vmatmul.mubr.msk.bf16.vlgmr.msra.gmra.mrb[8].mxu0 %vm193_vm3, %v501_v41 }
 0x5e9   :  { %2042 = vmatpush3.bf16.msra.mxu0 %v2707_v58  ;;  %2049 = vmatprep.mubr.msk.bf16.mxu0 %vm2505_vm0, %v2504_v0 }
 0x5ea   :  { %2043 = vmatprep.subr.bf16.mxu0 %v2504_v0 }
 0x5ec   :  { %v622_v43 = vpop.permute.xlu0 %621 }
 0x5ed   :  { %2044 = vmatpush3.bf16.msra.mxu0 %v2713_v61  ;;  %v625_v44 = vsel %vm193_vm3, %v613_v42, %v622_v43 }
 0x5ee   :  { %v628_v45 = vshll.u32 %v625_v44, 16  ;;  %2045 = vmatprep.subr.bf16.mxu0 %v2504_v0  ;;  %v626_v47 = vshrl.u32 %v625_v44, 16 }
 0x5f0   :  { %v630_v46 = vrot.slane %v628_v45, 1 }
 0x5f1   :  { %2046 = vmatpush3.bf16.msra.mxu0 %v2718_v2 }
 0x5f2   :  { %2047 = vmatprep.subr.bf16.mxu0 %v2504_v0  ;;  %v631_v48 = vor.u32 %v630_v46, %v626_v47 }
 0x5f5   :  { %2048 = vmatpush3.bf16.msra.mxu0 %v2723_v6 }
 0x5f6   :  { %2073 = vmatprep.subr.bf16.mxu0 %v2504_v0 }
 0x5f8   :  { %2050 = vmatmul.mubr.msk.bf16.vlgmr.msra.gmra.mrb[12].mxu0 %vm421_vm5, %v631_v48 }
 0x5f9   :  { %2074 = vmatpush3.bf16.msra.mxu0 %v2646_v4  ;;  %2077 = vmatprep.mubr.msk.bf16.mxu0 %vm2505_vm0, %v2504_v0 }
 0x5fa   :  { %2075 = vmatprep.subr.bf16.mxu0 %v2504_v0 }
 0x5fd   :  { %2076 = vmatpush3.bf16.msra.mxu0 %v2661_v13 }
 0x5fe   :  { %2081 = vmatprep.subr.bf16.mxu0 %v2504_v0 }
 0x6bb   :  { %v539_v50 = vpop.f32.mrb[8].mxu0 }
 0x6bc   :  { %v546_v51 = vrot.slane %v539_v50, 6  ;;  %v547_v53 = vrot.slane %v539_v50, 7  ;;  %v2039_v54 = vpop.f32.mrb[9].mxu0 }
 0x6bd   :  { %v542_v55 = vpop.f32.mrb[10].mxu0 }
 0x6be   :  { %v550_v56 = vadd.f32 %v546_v51, %v2683_v26  ;;  %v551_v57 = vadd.f32 %v547_v53, %v2681_v21  ;;  %v2040_v59 = vpop.f32.mrb[11].mxu0 }
 0x6c0   :  { %2225 = vtanh.f32 %v550_v56  ;;  %v1897_v11 = vmul.f32 -1.442695, %v550_v56  ;;  %v1898_v12 = vmul.f32 -1.442695, %v551_v57 }
 0x6c1   :  { %2227 = vtanh.f32 %v551_v57 }
 0x6ca   :  { %v2226_v60 = vpop.eup %2225 }
 0x6cb   :  { %v2228_v62 = vpop.eup %2227  ;;  %v669_v63 = vpop.f32.mrb[12].mxu0  ;;  %576 = vrot.lane.b32.xlu1 %v2226_v60, %s2506_s5 }
 0x6cc   :  { %v670_v1 = vadd.f32 %v2750_v32, %v669_v63  ;;  %578 = vrot.lane.b32.xlu0 %v2228_v62, %s2506_s5  ;;  %v2051_v3 = vpop.f32.mrb[13].mxu0 }
 0x6cd   :  { %v672_v5 = vpop.f32.mrb[14].mxu0 }
 0x6ce   :  { %2229 = vtanh.f32 %v670_v1  ;;  %v2052_v8 = vpop.f32.mrb[15].mxu0  ;;  %v1900_v49 = vmul.f32 -1.442695, %v670_v1 }
 0x6cf   :  { %2231 = vpow2.f32 %v1897_v11 }
 0x6d0   :  { %2233 = vpow2.f32 %v1898_v12 }
 0x6d1   :  { %2235 = vpow2.f32 %v1900_v49 }
 0x6d8   :  { %v2230_v9 = vpop.eup %2229 }
 0x6d9   :  { %684 = vrot.lane.b32.xlu1 %v2230_v9, %s2506_s5  ;;  %v2232_v14 = vpop.eup %2231 }
 0x6da   :  { %v2234_v52 = vpop.eup %2233  ;;  %v558_v16 = vadd.f32 1.0, %v2232_v14 }
 0x6db   :  { %v559_v17 = vadd.f32 1.0, %v2234_v52  ;;  %v2236_v18 = vpop.eup %2235 }
 0x6dc   :  { %2237 = vrcp.f32 %v558_v16  ;;  %v678_v20 = vadd.f32 1.0, %v2236_v18 }
 0x6dd   :  { %2239 = vrcp.f32 %v559_v17 }
 0x6de   :  { %2241 = vrcp.f32 %v678_v20 }
 0x6e6   :  { %v2238_v19 = vpop.eup %2237 }
 0x6e7   :  { %v2240_v23 = vpop.eup %2239  ;;  %v572_v34 = vmul.f32 %v2238_v19, %v568_v31 }
 0x6e8   :  { %v2242_v28 = vpop.eup %2241  ;;  %v573_v36 = vmul.f32 %v2240_v23, %v569_v33 }
 0x6e9   :  { %v682_v41 = vmul.f32 %v2242_v28, %v2768_v15 }
 0x73d   :  { %v577_v22 = vpop.permute.xlu1 %576 }
 0x73e   :  { %v579_v24 = vpop.permute.xlu0 %578  ;;  %v582_v25 = vmul.f32 %v2238_v19, %v577_v22 }
 0x73f   :  { %v583_v27 = vmul.f32 %v2240_v23, %v579_v24 }
 0x740   :  { %586 = vrot.lane.b32.xlu0 %v582_v25, %s2498_s29 }
 0x741   :  { %588 = vrot.lane.b32.xlu1 %v583_v27, %s2498_s29 }
 0x74b   :  { %v685_v29 = vpop.permute.xlu1 %684 }
 0x74c   :  { %v687_v30 = vmul.f32 %v2242_v28, %v685_v29 }
 0x74e   :  { %689 = vrot.lane.b32.xlu0 %v687_v30, %s2498_s29 }
 0x7b2   :  { %v587_v35 = vpop.permute.xlu0 %586 }
 0x7b3   :  { %v2808_v37 = vadd.f32 %v587_v35, %v572_v34  ;;  %v589_v38 = vpop.permute.xlu1 %588 }
 0x7b4   :  { %v2810_v39 = vadd.f32 %v589_v38, %v573_v36 }
 0x7b5   :  { %2243 = vtanh.f32 %v2808_v37 }
 0x7b6   :  { %2245 = vtanh.f32 %v2810_v39 }
 0x7bf   :  { %v2244_v40 = vpop.eup %2243 }
 0x7c0   :  { %v2246_v42 = vpop.eup %2245  ;;  %v690_v43 = vpop.permute.xlu0 %689  ;;  %598 = vrot.lane.b32.xlu1 %v2244_v40, %s2506_s5 }
 0x7c1   :  { %v2816_v7 = vadd.f32 %v690_v43, %v682_v41  ;;  %600 = vrot.lane.b32.xlu0 %v2246_v42, %s2506_s5 }
 0x7c3   :  { %2247 = vtanh.f32 %v2816_v7 }
 0x7cd   :  { %v2248_v10 = vpop.eup %2247 }
 0x7ce   :  { %695 = vrot.lane.b32.xlu1 %v2248_v10, %s2506_s5 }
 0x832   :  { %v599_v44 = vpop.permute.xlu1 %598 }
 0x833   :  { %v604_v45 = vmul.f32 %v2238_v19, %v599_v44  ;;  %v601_v46 = vpop.permute.xlu0 %600 }
 0x834   :  { %v605_v47 = vmul.f32 %v2240_v23, %v601_v46 }
 0x835   :  { %v606_v48 = vpack.c.bf16 %v604_v45, %v604_v45 }
 0x836   :  { %v607_v50 = vpack.c.bf16 %v605_v47, %v605_v47 }
 0x837   :  { %v702_v15 = vunpack.c.l.b16 %v606_v48 }
 0x838   :  { %v703_v51 = vunpack.c.l.b16 %v607_v50 }
 0x839   :  { %v704_v53 = vrot.slane %v702_v15, 2 }
 0x83a   :  { %v705_v54 = vrot.slane %v703_v51, 1  ;;  %v816_v55 = vrot.slane %v703_v51, 7  ;;  %v776_v51 = vrot.slane %v2808_v37, 7 }
 0x83c   :  { %v706_v56 = vsel %vm306_vm4, %v705_v54, %v704_v53  ;;  %v818_v57 = vsel %vm817_vm7, %v816_v55, %v702_v15  ;;  %v777_v53 = vrot.slane %v2810_v39, 7 }
 0x83d   :  { %v707_v59 = vpack.c.b16 %v706_v56, %v706_v56  ;;  %v819_v60 = vpack.c.b16 %v818_v57, %v818_v57 }
 0x83f   :  { %708 = vrot.lane.b32.xlu0 %v707_v59, %s2498_s29  ;;  %820 = vrot.lane.b32.xlu1 %v819_v60, %s2498_s29 }
 0x840   :  { %v696_v62 = vpop.permute.xlu1 %695 }
 0x841   :  { %v698_v63 = vmul.f32 %v2242_v28, %v696_v62 }
 0x843   :  { %v699_v1 = vpack.c.bf16 %v698_v63, %v698_v63 }
 0x845   :  { %v823_v3 = vrot.slane %v699_v1, 7 }
 0x847   :  { %824 = vrot.lane.b32.xlu0 %v823_v3, %s2506_s5 }
 0x8b1   :  { %v709_v5 = vpop.permute.xlu0 %708  ;;  %v821_v9 = vpop.permute.xlu1 %820 }
 0x8b2   :  { %2058 = vmatmul.mubr.msk.bf16.vlgmr.msra.gmra.mrb[8].mxu1 %vm193_vm3, %v709_v5 }
 0x8b3   :  { %2062 = vmatpush3.bf16.msra.mxu1 %v2707_v58  ;;  %2069 = vmatprep.mubr.msk.bf16.mxu1 %vm2505_vm0, %v2504_v0 }
 0x8b4   :  { %2063 = vmatprep.subr.bf16.mxu1 %v2504_v0 }
 0x8b7   :  { %2064 = vmatpush3.bf16.msra.mxu1 %v2713_v61 }
 0x8b8   :  { %2065 = vmatprep.subr.bf16.mxu1 %v2504_v0 }
 0x8b9   :  { %v825_v8 = vpop.permute.xlu0 %824 }
 0x8ba   :  { %v828_v11 = vsel %vm193_vm3, %v821_v9, %v825_v8 }
 0x8bb   :  { %2066 = vmatpush3.bf16.msra.mxu1 %v2718_v2  ;;  %v830_v12 = vrot.slane %v828_v11, 1 }
 0x8bc   :  { %2067 = vmatprep.subr.bf16.mxu1 %v2504_v0 }
 0x8bf   :  { %2068 = vmatpush3.bf16.msra.mxu1 %v2723_v6 }
 0x8c0   :  { %2093 = vmatprep.subr.bf16.mxu1 %v2504_v0 }
 0x8c2   :  { %2070 = vmatmul.mubr.msk.bf16.vlgmr.msra.gmra.mrb[12].mxu1 %vm421_vm5, %v830_v12 }
 0x8c3   :  { %2094 = vmatpush3.bf16.msra.mxu1 %v2646_v4  ;;  %2097 = vmatprep.mubr.msk.bf16.mxu1 %vm2505_vm0, %v2504_v0 }
 0x8c4   :  { %2095 = vmatprep.subr.bf16.mxu1 %v2504_v0 }
 0x8c7   :  { %2096 = vmatpush3.bf16.msra.mxu1 %v2661_v13 }
 0x8c8   :  { %2101 = vmatprep.subr.bf16.mxu1 %v2504_v0 }
 0x985   :  { %v747_v14 = vpop.f32.mrb[8].mxu1 }
 0x986   :  { %v754_v49 = vrot.slane %v747_v14, 5  ;;  %v755_v52 = vrot.slane %v747_v14, 6  ;;  %v2059_v16 = vpop.f32.mrb[9].mxu1 }
 0x987   :  { %v750_v17 = vpop.f32.mrb[10].mxu1 }
 0x988   :  { %v758_v18 = vadd.f32 %v754_v49, %v2683_v26  ;;  %v759_v19 = vadd.f32 %v755_v52, %v2681_v21  ;;  %v2060_v20 = vpop.f32.mrb[11].mxu1 }
 0x98a   :  { %2249 = vtanh.f32 %v758_v18  ;;  %v1902_v31 = vmul.f32 -1.442695, %v758_v18  ;;  %v1903_v33 = vmul.f32 -1.442695, %v759_v19 }
 0x98b   :  { %2251 = vtanh.f32 %v759_v19 }
 0x994   :  { %v2250_v22 = vpop.eup %2249 }
 0x995   :  { %v2252_v23 = vpop.eup %2251  ;;  %v868_v24 = vpop.f32.mrb[12].mxu1  ;;  %784 = vrot.lane.b32.xlu1 %v2250_v22, %s2506_s5 }
 0x996   :  { %v869_v25 = vadd.f32 %v2750_v32, %v868_v24  ;;  %786 = vrot.lane.b32.xlu0 %v2252_v23, %s2506_s5  ;;  %v2071_v27 = vpop.f32.mrb[13].mxu1 }
 0x997   :  { %v871_v28 = vpop.f32.mrb[14].mxu1 }
 0x998   :  { %2253 = vtanh.f32 %v869_v25  ;;  %v2072_v29 = vpop.f32.mrb[15].mxu1  ;;  %v1905_v35 = vmul.f32 -1.442695, %v869_v25 }
 0x999   :  { %2255 = vpow2.f32 %v1902_v31 }
 0x99a   :  { %2257 = vpow2.f32 %v1903_v33 }
 0x99b   :  { %2259 = vpow2.f32 %v1905_v35 }
 0x9a2   :  { %v2254_v30 = vpop.eup %2253 }
 0x9a3   :  { %883 = vrot.lane.b32.xlu1 %v2254_v30, %s2506_s5  ;;  %v2256_v34 = vpop.eup %2255 }
 0x9a4   :  { %v2258_v36 = vpop.eup %2257  ;;  %v766_v38 = vadd.f32 1.0, %v2256_v34 }
 0x9a5   :  { %v767_v40 = vadd.f32 1.0, %v2258_v36  ;;  %v2260_v41 = vpop.eup %2259 }
 0x9a6   :  { %2261 = vrcp.f32 %v766_v38  ;;  %v877_v43 = vadd.f32 1.0, %v2260_v41 }
 0x9a7   :  { %2263 = vrcp.f32 %v767_v40 }
 0x9a8   :  { %2265 = vrcp.f32 %v877_v43 }
 0x9b0   :  { %v2262_v42 = vpop.eup %2261 }
 0x9b1   :  { %v2264_v44 = vpop.eup %2263  ;;  %v780_v54 = vmul.f32 %v2262_v42, %v776_v51 }
 0x9b2   :  { %v2266_v48 = vpop.eup %2265  ;;  %v781_v56 = vmul.f32 %v2264_v44, %v777_v53 }
 0x9b3   :  { %v881_v63 = vmul.f32 %v2266_v48, %v2816_v7 }
 0xa07   :  { %v785_v10 = vpop.permute.xlu1 %784 }
 0xa08   :  { %v787_v45 = vpop.permute.xlu0 %786  ;;  %v790_v46 = vmul.f32 %v2262_v42, %v785_v10 }
 0xa09   :  { %v791_v47 = vmul.f32 %v2264_v44, %v787_v45 }
 0xa0a   :  { %794 = vrot.lane.b32.xlu0 %v790_v46, %s2498_s29 }
 0xa0b   :  { %796 = vrot.lane.b32.xlu1 %v791_v47, %s2498_s29 }
 0xa15   :  { %v884_v50 = vpop.permute.xlu1 %883 }
 0xa16   :  { %v886_v15 = vmul.f32 %v2266_v48, %v884_v50 }
 0xa18   :  { %888 = vrot.lane.b32.xlu0 %v886_v15, %s2498_s29 }
 0xa7c   :  { %v795_v55 = vpop.permute.xlu0 %794 }
 0xa7d   :  { %v2855_v57 = vadd.f32 %v795_v55, %v780_v54  ;;  %v797_v59 = vpop.permute.xlu1 %796 }
 0xa7e   :  { %v2857_v60 = vadd.f32 %v797_v59, %v781_v56 }
 0xa7f   :  { %2267 = vtanh.f32 %v2855_v57 }
 0xa80   :  { %2269 = vtanh.f32 %v2857_v60 }
 0xa89   :  { %v2268_v62 = vpop.eup %2267 }
 0xa8a   :  { %v2270_v1 = vpop.eup %2269  ;;  %v889_v3 = vpop.permute.xlu0 %888  ;;  %806 = vrot.lane.b32.xlu1 %v2268_v62, %s2506_s5 }
 0xa8b   :  { %v2863_v37 = vadd.f32 %v889_v3, %v881_v63  ;;  %808 = vrot.lane.b32.xlu0 %v2270_v1, %s2506_s5 }
 0xa8d   :  { %2271 = vtanh.f32 %v2863_v37 }
 0xa97   :  { %v2272_v39 = vpop.eup %2271 }
 0xa98   :  { %894 = vrot.lane.b32.xlu1 %v2272_v39, %s2506_s5 }
 0xafc   :  { %v807_v5 = vpop.permute.xlu1 %806 }
 0xafd   :  { %v809_v8 = vpop.permute.xlu0 %808  ;;  %v812_v9 = vmul.f32 %v2262_v42, %v807_v5 }
 0xafe   :  { %v813_v11 = vmul.f32 %v2264_v44, %v809_v8 }
 0xaff   :  { %v814_v12 = vpack.c.bf16 %v812_v9, %v812_v9 }
 0xb00   :  { %v815_v14 = vpack.c.bf16 %v813_v11, %v813_v11 }
 0xb01   :  { %v901_v7 = vunpack.c.l.b16 %v814_v12 }
 0xb02   :  { %v902_v49 = vunpack.c.l.b16 %v815_v14 }
 0xb03   :  { %v903_v52 = vrot.slane %v901_v7, 3 }
 0xb04   :  { %v904_v16 = vrot.slane %v902_v49, 2  ;;  %v1015_v17 = vrot.slane %v902_v49, 7 }
 0xb06   :  { %v1017_v18 = vsel %vm1016_vm8, %v1015_v17, %v901_v7  ;;  %v905_v19 = vsel %vm306_vm4, %v904_v16, %v903_v52 }
 0xb07   :  { %v1018_v20 = vpack.c.b16 %v1017_v18, %v1017_v18  ;;  %v906_v22 = vpack.c.b16 %v905_v19, %v905_v19 }
 0xb09   :  { %1019 = vrot.lane.b32.xlu1 %v1018_v20, %s2498_s29  ;;  %907 = vrot.lane.b32.xlu0 %v906_v22, %s2498_s29 }
 0xb0a   :  { %v895_v23 = vpop.permute.xlu1 %894 }
 0xb0b   :  { %v897_v24 = vmul.f32 %v2266_v48, %v895_v23  ;;  %v975_v23 = vrot.slane %v2855_v57, 7 }
 0xb0d   :  { %v898_v25 = vpack.c.bf16 %v897_v24, %v897_v24  ;;  %v976_v24 = vrot.slane %v2857_v60, 7 }
 0xb0f   :  { %v1022_v27 = vshrl.u32 %v898_v25, 16  ;;  %v1025_v28 = vshll.u32 %v898_v25, 16 }
 0xb11   :  { %v1024_v29 = vrot.slane %v1022_v27, 6  ;;  %v1027_v30 = vrot.slane %v1025_v28, 7 }
 0xb13   :  { %v1028_v31 = vor.u32 %v1027_v30, %v1024_v29 }
 0xb15   :  { %1029 = vrot.lane.b32.xlu0 %v1028_v31, %s2506_s5 }
 0xb7b   :  { %v908_v33 = vpop.permute.xlu0 %907  ;;  %v1020_v34 = vpop.permute.xlu1 %1019 }
 0xb7c   :  { %2078 = vmatmul.mubr.msk.bf16.vlgmr.msra.gmra.mrb[16].mxu0 %vm193_vm3, %v908_v33 }
 0xb7d   :  { %2082 = vmatpush3.bf16.msra.mxu0 %v2707_v58  ;;  %2089 = vmatprep.mubr.msk.bf16.mxu0 %vm2505_vm0, %v2504_v0 }
 0xb7e   :  { %2083 = vmatprep.subr.bf16.mxu0 %v2504_v0 }
 0xb81   :  { %2084 = vmatpush3.bf16.msra.mxu0 %v2713_v61 }
 0xb82   :  { %2085 = vmatprep.subr.bf16.mxu0 %v2504_v0 }
 0xb85   :  { %2086 = vmatpush3.bf16.msra.mxu0 %v2718_v2 }
 0xb86   :  { %2087 = vmatprep.subr.bf16.mxu0 %v2504_v0 }
 0xb87   :  { %v1030_v35 = vpop.permute.xlu0 %1029 }
 0xb88   :  { %v1033_v36 = vsel %vm193_vm3, %v1020_v34, %v1030_v35 }
 0xb89   :  { %v1034_v38 = vshrl.u32 %v1033_v36, 16  ;;  %v1037_v40 = vshll.u32 %v1033_v36, 16  ;;  %2088 = vmatpush3.bf16.msra.mxu0 %v2723_v6 }
 0xb8a   :  { %2113 = vmatprep.subr.bf16.mxu0 %v2504_v0 }
 0xb8b   :  { %v1036_v41 = vrot.slane %v1034_v38, 1  ;;  %v1039_v42 = vrot.slane %v1037_v40, 2 }
 0xb8d   :  { %v1040_v43 = vor.u32 %v1039_v42, %v1036_v41 }
 0xb8f   :  { %2090 = vmatmul.mubr.msk.bf16.vlgmr.msra.gmra.mrb[20].mxu0 %vm421_vm5, %v1040_v43 }
 0xb90   :  { %2114 = vmatpush3.bf16.msra.mxu0 %v2646_v4  ;;  %2117 = vmatprep.mubr.msk.bf16.mxu0 %vm2505_vm0, %v2504_v0 }
 0xb91   :  { %2115 = vmatprep.subr.bf16.mxu0 %v2504_v0 }
 0xb94   :  { %2116 = vmatpush3.bf16.msra.mxu0 %v2661_v13 }
 0xb95   :  { %2121 = vmatprep.subr.bf16.mxu0 %v2504_v0 }
 0xc4f   :  { %v946_v10 = vpop.f32.mrb[16].mxu0 }
 0xc50   :  { %v953_v44 = vrot.slane %v946_v10, 4  ;;  %v954_v45 = vrot.slane %v946_v10, 5  ;;  %v2079_v46 = vpop.f32.mrb[17].mxu0 }
 0xc51   :  { %v949_v47 = vpop.f32.mrb[18].mxu0 }
 0xc52   :  { %v957_v48 = vadd.f32 %v953_v44, %v2683_v26  ;;  %v958_v50 = vadd.f32 %v954_v45, %v2681_v21  ;;  %v2080_v15 = vpop.f32.mrb[19].mxu0 }
 0xc54   :  { %2273 = vtanh.f32 %v957_v48  ;;  %v1907_v1 = vmul.f32 -1.442695, %v957_v48  ;;  %v1908_v3 = vmul.f32 -1.442695, %v958_v50 }
 0xc55   :  { %2275 = vtanh.f32 %v958_v50 }
 0xc5e   :  { %v2274_v51 = vpop.eup %2273 }
 0xc5f   :  { %v2276_v53 = vpop.eup %2275  ;;  %983 = vrot.lane.b32.xlu1 %v2274_v51, %s2506_s5 }
 0xc60   :  { %985 = vrot.lane.b32.xlu0 %v2276_v53, %s2506_s5 }
 0xc62   :  { %v1078_v54 = vpop.f32.mrb[20].mxu0 }
 0xc63   :  { %v1079_v55 = vadd.f32 %v2750_v32, %v1078_v54  ;;  %v2091_v56 = vpop.f32.mrb[21].mxu0 }
 0xc64   :  { %v1081_v59 = vpop.f32.mrb[22].mxu0 }
 0xc65   :  { %2277 = vtanh.f32 %v1079_v55  ;;  %v2092_v62 = vpop.f32.mrb[23].mxu0  ;;  %v1910_v9 = vmul.f32 -1.442695, %v1079_v55 }
 0xc66   :  { %2279 = vpow2.f32 %v1907_v1 }
 0xc67   :  { %2281 = vpow2.f32 %v1908_v3 }
 0xc6f   :  { %v2278_v63 = vpop.eup %2277 }
 0xc70   :  { %1093 = vrot.lane.b32.xlu1 %v2278_v63, %s2506_s5  ;;  %v2280_v39 = vpop.eup %2279 }
 0xc71   :  { %v2282_v5 = vpop.eup %2281  ;;  %v965_v8 = vadd.f32 1.0, %v2280_v39 }
 0xc72   :  { %v966_v11 = vadd.f32 1.0, %v2282_v5 }
 0xc73   :  { %2283 = vrcp.f32 %v965_v8 }
 0xc74   :  { %2285 = vpow2.f32 %v1910_v9 }
 0xc75   :  { %2287 = vrcp.f32 %v966_v11 }
 0xc7d   :  { %v2284_v12 = vpop.eup %2283 }
 0xc7e   :  { %v2286_v14 = vpop.eup %2285  ;;  %v979_v25 = vmul.f32 %v2284_v12, %v975_v23 }
 0xc7f   :  { %v2288_v49 = vpop.eup %2287  ;;  %v1087_v18 = vadd.f32 1.0, %v2286_v14 }
 0xc80   :  { %v980_v28 = vmul.f32 %v2288_v49, %v976_v24 }
 0xc81   :  { %2289 = vrcp.f32 %v1087_v18 }
 0xc8b   :  { %v2290_v19 = vpop.eup %2289 }
 0xc8c   :  { %v1091_v57 = vmul.f32 %v2290_v19, %v2863_v37 }
 0xcd1   :  { %v984_v7 = vpop.permute.xlu1 %983 }
 0xcd2   :  { %v986_v52 = vpop.permute.xlu0 %985  ;;  %v989_v16 = vmul.f32 %v2284_v12, %v984_v7 }
 0xcd3   :  { %v990_v17 = vmul.f32 %v2288_v49, %v986_v52 }
 0xcd4   :  { %993 = vrot.lane.b32.xlu0 %v989_v16, %s2498_s29 }
 0xcd5   :  { %995 = vrot.lane.b32.xlu1 %v990_v17, %s2498_s29 }
 0xce2   :  { %v1094_v20 = vpop.permute.xlu1 %1093 }
 0xce3   :  { %v1096_v22 = vmul.f32 %v2290_v19, %v1094_v20 }
 0xce5   :  { %1098 = vrot.lane.b32.xlu0 %v1096_v22, %s2498_s29 }
 0xd46   :  { %v994_v27 = vpop.permute.xlu0 %993 }
 0xd47   :  { %v2902_v29 = vadd.f32 %v994_v27, %v979_v25  ;;  %v996_v30 = vpop.permute.xlu1 %995 }
 0xd48   :  { %v2904_v31 = vadd.f32 %v996_v30, %v980_v28 }
 0xd49   :  { %2291 = vtanh.f32 %v2902_v29 }
 0xd4a   :  { %2293 = vtanh.f32 %v2904_v31 }
 0xd53   :  { %v2292_v33 = vpop.eup %2291 }
 0xd54   :  { %v2294_v34 = vpop.eup %2293  ;;  %1005 = vrot.lane.b32.xlu1 %v2292_v33, %s2506_s5 }
 0xd55   :  { %1007 = vrot.lane.b32.xlu0 %v2294_v34, %s2506_s5 }
 0xd57   :  { %v1099_v60 = vpop.permute.xlu0 %1098 }
 0xd58   :  { %v2911_v35 = vadd.f32 %v1099_v60, %v1091_v57 }
 0xd5a   :  { %2295 = vtanh.f32 %v2911_v35 }
 0xd64   :  { %v2296_v36 = vpop.eup %2295 }
 0xd65   :  { %1104 = vrot.lane.b32.xlu1 %v2296_v36, %s2506_s5 }
 0xdc6   :  { %v1006_v38 = vpop.permute.xlu1 %1005 }
 0xdc7   :  { %v1011_v40 = vmul.f32 %v2284_v12, %v1006_v38  ;;  %v1008_v41 = vpop.permute.xlu0 %1007 }
 0xdc8   :  { %v1012_v42 = vmul.f32 %v2288_v49, %v1008_v41 }
 0xdc9   :  { %v1013_v43 = vpack.c.bf16 %v1011_v40, %v1011_v40 }
 0xdca   :  { %v1014_v10 = vpack.c.bf16 %v1012_v42, %v1012_v42 }
 0xdcb   :  { %v1111_v44 = vunpack.c.l.b16 %v1013_v43  ;;  %v1185_v43 = vrot.slane %v2902_v29, 7 }
 0xdcc   :  { %v1112_v45 = vunpack.c.l.b16 %v1014_v10  ;;  %v1186_v10 = vrot.slane %v2904_v31, 7 }
 0xdcd   :  { %v1113_v46 = vrot.slane %v1111_v44, 4 }
 0xdce   :  { %v1114_v47 = vrot.slane %v1112_v45, 3  ;;  %v1225_v37 = vrot.slane %v1112_v45, 7 }
 0xdd0   :  { %v1115_v48 = vsel %vm306_vm4, %v1114_v47, %v1113_v46  ;;  %v1227_v50 = vsel %vm1226_vm9, %v1225_v37, %v1111_v44 }
 0xdd1   :  { %v1116_v15 = vpack.c.b16 %v1115_v48, %v1115_v48  ;;  %v1228_v51 = vpack.c.b16 %v1227_v50, %v1227_v50 }
 0xdd3   :  { %1117 = vrot.lane.b32.xlu0 %v1116_v15, %s2498_s29  ;;  %1229 = vrot.lane.b32.xlu1 %v1228_v51, %s2498_s29 }
 0xdd7   :  { %v1105_v53 = vpop.permute.xlu1 %1104 }
 0xdd8   :  { %v1107_v54 = vmul.f32 %v2290_v19, %v1105_v53 }
 0xdda   :  { %v1108_v55 = vpack.c.bf16 %v1107_v54, %v1107_v54 }
 0xddc   :  { %v1232_v56 = vrot.slane %v1108_v55, 6 }
 0xdde   :  { %1233 = vrot.lane.b32.xlu0 %v1232_v56, %s2506_s5 }
 0xe45   :  { %v1118_v59 = vpop.permute.xlu0 %1117  ;;  %v1230_v62 = vpop.permute.xlu1 %1229 }
 0xe46   :  { %2098 = vmatmul.mubr.msk.bf16.vlgmr.msra.gmra.mrb[16].mxu1 %vm193_vm3, %v1118_v59 }
 0xe47   :  { %2102 = vmatpush3.bf16.msra.mxu1 %v2707_v58  ;;  %2109 = vmatprep.mubr.msk.bf16.mxu1 %vm2505_vm0, %v2504_v0 }
 0xe48   :  { %2103 = vmatprep.subr.bf16.mxu1 %v2504_v0 }
 0xe4b   :  { %2104 = vmatpush3.bf16.msra.mxu1 %v2713_v61 }
 0xe4c   :  { %2105 = vmatprep.subr.bf16.mxu1 %v2504_v0 }
 0xe4f   :  { %2106 = vmatpush3.bf16.msra.mxu1 %v2718_v2 }
 0xe50   :  { %2107 = vmatprep.subr.bf16.mxu1 %v2504_v0  ;;  %v1234_v63 = vpop.permute.xlu0 %1233 }
 0xe51   :  { %v1237_v1 = vsel %vm193_vm3, %v1230_v62, %v1234_v63 }
 0xe52   :  { %v1239_v3 = vrot.slane %v1237_v1, 2 }
 0xe53   :  { %2108 = vmatpush3.bf16.msra.mxu1 %v2723_v6 }
 0xe54   :  { %2133 = vmatprep.subr.bf16.mxu1 %v2504_v0 }
 0xe56   :  { %2110 = vmatmul.mubr.msk.bf16.vlgmr.msra.gmra.mrb[20].mxu1 %vm421_vm5, %v1239_v3 }
 0xe57   :  { %2134 = vmatpush3.bf16.msra.mxu1 %v2646_v4  ;;  %2137 = vmatprep.mubr.msk.bf16.mxu1 %vm2505_vm0, %v2504_v0 }
 0xe58   :  { %2135 = vmatprep.subr.bf16.mxu1 %v2504_v0 }
 0xe5b   :  { %2136 = vmatpush3.bf16.msra.mxu1 %v2661_v13 }
 0xe5c   :  { %2141 = vmatprep.subr.bf16.mxu1 %v2504_v0 }
 0xf19   :  { %v1156_v39 = vpop.f32.mrb[16].mxu1 }
 0xf1a   :  { %v1163_v5 = vrot.slane %v1156_v39, 3  ;;  %v1164_v8 = vrot.slane %v1156_v39, 4  ;;  %v2099_v9 = vpop.f32.mrb[17].mxu1 }
 0xf1b   :  { %v1159_v11 = vpop.f32.mrb[18].mxu1 }
 0xf1c   :  { %v1167_v12 = vadd.f32 %v1163_v5, %v2683_v26  ;;  %v1168_v14 = vadd.f32 %v1164_v8, %v2681_v21  ;;  %v2100_v7 = vpop.f32.mrb[19].mxu1 }
 0xf1e   :  { %2297 = vtanh.f32 %v1167_v12  ;;  %v1912_v20 = vmul.f32 -1.442695, %v1167_v12  ;;  %v1913_v22 = vmul.f32 -1.442695, %v1168_v14 }
 0xf1f   :  { %2299 = vtanh.f32 %v1168_v14 }
 0xf28   :  { %v2298_v4 = vpop.eup %2297 }
 0xf29   :  { %v2300_v49 = vpop.eup %2299  ;;  %v1277_v52 = vpop.f32.mrb[20].mxu1  ;;  %1193 = vrot.lane.b32.xlu1 %v2298_v4, %s2506_s5 }
 0xf2a   :  { %v1278_v13 = vadd.f32 %v2750_v32, %v1277_v52  ;;  %1195 = vrot.lane.b32.xlu0 %v2300_v49, %s2506_s5  ;;  %v2111_v16 = vpop.f32.mrb[21].mxu1 }
 0xf2b   :  { %v1280_v17 = vpop.f32.mrb[22].mxu1 }
 0xf2c   :  { %2301 = vtanh.f32 %v1278_v13  ;;  %v2112_v18 = vpop.f32.mrb[23].mxu1  ;;  %v1915_v24 = vmul.f32 -1.442695, %v1278_v13 }
 0xf2d   :  { %2303 = vpow2.f32 %v1912_v20 }
 0xf2e   :  { %2305 = vpow2.f32 %v1913_v22 }
 0xf2f   :  { %2307 = vpow2.f32 %v1915_v24 }
 0xf36   :  { %v2302_v19 = vpop.eup %2301 }
 0xf37   :  { %1292 = vrot.lane.b32.xlu1 %v2302_v19, %s2506_s5  ;;  %v2304_v23 = vpop.eup %2303 }
 0xf38   :  { %v2306_v25 = vpop.eup %2305  ;;  %v1175_v27 = vadd.f32 1.0, %v2304_v23 }
 0xf39   :  { %v1176_v28 = vadd.f32 1.0, %v2306_v25  ;;  %v2308_v32 = vpop.eup %2307 }
 0xf3a   :  { %2309 = vrcp.f32 %v1175_v27  ;;  %v1286_v33 = vadd.f32 1.0, %v2308_v32 }
 0xf3b   :  { %2311 = vrcp.f32 %v1176_v28 }
 0xf3c   :  { %2313 = vrcp.f32 %v1286_v33 }
 0xf44   :  { %v2310_v30 = vpop.eup %2309 }
 0xf45   :  { %v2312_v57 = vpop.eup %2311  ;;  %v1189_v44 = vmul.f32 %v2310_v30, %v1185_v43  ;;  %v2995_v43 = vld [vmem:[%s3097_s8] ss:$0 sm:$0xff] }
 0xf46   :  { %v2314_v40 = vpop.eup %2313  ;;  %v1190_v46 = vmul.f32 %v2312_v57, %v1186_v10 }
 0xf47   :  { %v1290_v15 = vmul.f32 %v2314_v40, %v2911_v35 }
 0xf9b   :  { %v1194_v34 = vpop.permute.xlu1 %1193 }
 0xf9c   :  { %v1196_v60 = vpop.permute.xlu0 %1195  ;;  %v1199_v36 = vmul.f32 %v2310_v30, %v1194_v34 }
 0xf9d   :  { %v1200_v38 = vmul.f32 %v2312_v57, %v1196_v60 }
 0xf9e   :  { %1203 = vrot.lane.b32.xlu0 %v1199_v36, %s2498_s29 }
 0xf9f   :  { %1205 = vrot.lane.b32.xlu1 %v1200_v38, %s2498_s29 }
 0xfa9   :  { %v1293_v41 = vpop.permute.xlu1 %1292 }
 0xfaa   :  { %v1295_v42 = vmul.f32 %v2314_v40, %v1293_v41 }
 0xfac   :  { %1297 = vrot.lane.b32.xlu0 %v1295_v42, %s2498_s29 }
0x1010   :  { %v1204_v45 = vpop.permute.xlu0 %1203 }
0x1011   :  { %v2949_v47 = vadd.f32 %v1204_v45, %v1189_v44  ;;  %v1206_v37 = vpop.permute.xlu1 %1205 }
0x1012   :  { %v2951_v48 = vadd.f32 %v1206_v37, %v1190_v46 }
0x1013   :  { %2315 = vtanh.f32 %v2949_v47 }
0x1014   :  { %2317 = vtanh.f32 %v2951_v48 }
0x101d   :  { %v2316_v50 = vpop.eup %2315 }
0x101e   :  { %v2318_v51 = vpop.eup %2317  ;;  %v1298_v53 = vpop.permute.xlu0 %1297  ;;  %1215 = vrot.lane.b32.xlu1 %v2316_v50, %s2506_s5 }
0x101f   :  { %v2957_v29 = vadd.f32 %v1298_v53, %v1290_v15  ;;  %1217 = vrot.lane.b32.xlu0 %v2318_v51, %s2506_s5 }
0x1021   :  { %2319 = vtanh.f32 %v2957_v29 }
0x102b   :  { %v2320_v31 = vpop.eup %2319 }
0x102c   :  { %1303 = vrot.lane.b32.xlu1 %v2320_v31, %s2506_s5 }
0x1090   :  { %v1216_v54 = vpop.permute.xlu1 %1215 }
0x1091   :  { %v1218_v55 = vpop.permute.xlu0 %1217  ;;  %v1221_v56 = vmul.f32 %v2310_v30, %v1216_v54 }
0x1092   :  { %v1222_v59 = vmul.f32 %v2312_v57, %v1218_v55 }
0x1093   :  { %v1223_v62 = vpack.c.bf16 %v1221_v56, %v1221_v56 }
0x1094   :  { %v1224_v63 = vpack.c.bf16 %v1222_v59, %v1222_v59 }
0x1095   :  { %v1310_v35 = vunpack.c.l.b16 %v1223_v62 }
0x1096   :  { %v1311_v1 = vunpack.c.l.b16 %v1224_v63 }
0x1097   :  { %v1312_v3 = vrot.slane %v1310_v35, 5 }
0x1098   :  { %v1313_v39 = vrot.slane %v1311_v1, 4  ;;  %v1424_v5 = vrot.slane %v1311_v1, 7 }
0x109a   :  { %v1426_v8 = vsel %vm1425_vm10, %v1424_v5, %v1310_v35  ;;  %v1314_v9 = vsel %vm306_vm4, %v1313_v39, %v1312_v3 }
0x109b   :  { %v1427_v11 = vpack.c.b16 %v1426_v8, %v1426_v8  ;;  %v1315_v12 = vpack.c.b16 %v1314_v9, %v1314_v9 }
0x109d   :  { %1428 = vrot.lane.b32.xlu1 %v1427_v11, %s2498_s29  ;;  %1316 = vrot.lane.b32.xlu0 %v1315_v12, %s2498_s29  ;;  %v1384_v11 = vrot.slane %v2949_v47, 7  ;;  %v1385_v12 = vrot.slane %v2951_v48, 7 }
0x109e   :  { %v1304_v14 = vpop.permute.xlu1 %1303 }
0x109f   :  { %v1306_v7 = vmul.f32 %v2314_v40, %v1304_v14 }
0x10a1   :  { %v1307_v4 = vpack.c.bf16 %v1306_v7, %v1306_v7 }
0x10a3   :  { %v1431_v49 = vshrl.u32 %v1307_v4, 16  ;;  %v1434_v52 = vshll.u32 %v1307_v4, 16 }
0x10a5   :  { %v1433_v13 = vrot.slane %v1431_v49, 5  ;;  %v1436_v16 = vrot.slane %v1434_v52, 6 }
0x10a7   :  { %v1437_v17 = vor.u32 %v1436_v16, %v1433_v13 }
0x10a9   :  { %1438 = vrot.lane.b32.xlu0 %v1437_v17, %s2506_s5 }
0x110f   :  { %v1317_v18 = vpop.permute.xlu0 %1316  ;;  %v1429_v19 = vpop.permute.xlu1 %1428 }
0x1110   :  { %2118 = vmatmul.mubr.msk.bf16.vlgmr.msra.gmra.mrb[24].mxu0 %vm193_vm3, %v1317_v18 }
0x1111   :  { %2122 = vmatpush3.bf16.msra.mxu0 %v2707_v58  ;;  %2129 = vmatprep.mubr.msk.bf16.mxu0 %vm2505_vm0, %v2504_v0 }
0x1112   :  { %2123 = vmatprep.subr.bf16.mxu0 %v2504_v0 }
0x1115   :  { %2124 = vmatpush3.bf16.msra.mxu0 %v2713_v61 }
0x1116   :  { %2125 = vmatprep.subr.bf16.mxu0 %v2504_v0 }
0x1119   :  { %2126 = vmatpush3.bf16.msra.mxu0 %v2718_v2 }
0x111a   :  { %2127 = vmatprep.subr.bf16.mxu0 %v2504_v0 }
0x111b   :  { %v1439_v20 = vpop.permute.xlu0 %1438 }
0x111c   :  { %v1442_v22 = vsel %vm193_vm3, %v1429_v19, %v1439_v20 }
0x111d   :  { %v1443_v23 = vshrl.u32 %v1442_v22, 16  ;;  %v1446_v24 = vshll.u32 %v1442_v22, 16  ;;  %2128 = vmatpush3.bf16.msra.mxu0 %v2723_v6 }
0x111e   :  { %2153 = vmatprep.subr.bf16.mxu0 %v2504_v0 }
0x111f   :  { %v1445_v25 = vrot.slane %v1443_v23, 2  ;;  %v1448_v27 = vrot.slane %v1446_v24, 3 }
0x1121   :  { %v1449_v28 = vor.u32 %v1448_v27, %v1445_v25 }
0x1123   :  { %2130 = vmatmul.mubr.msk.bf16.vlgmr.msra.gmra.mrb[28].mxu0 %vm421_vm5, %v1449_v28 }
0x1124   :  { %2154 = vmatpush3.bf16.msra.mxu0 %v2707_v58  ;;  %2161 = vmatprep.mubr.msk.bf16.mxu0 %vm2505_vm0, %v2504_v0 }
0x1125   :  { %2155 = vmatprep.subr.bf16.mxu0 %v2504_v0 }
0x1128   :  { %2156 = vmatpush3.bf16.msra.mxu0 %v2713_v61 }
0x1129   :  { %2157 = vmatprep.subr.bf16.mxu0 %v2504_v0 }
0x112c   :  { %2158 = vmatpush3.bf16.msra.mxu0 %v2718_v2 }
0x112d   :  { %2159 = vmatprep.subr.bf16.mxu0 %v2504_v0 }
0x1130   :  { %2160 = vmatpush3.bf16.msra.mxu0 %v2723_v6 }
0x11e3   :  { %v1355_v32 = vpop.f32.mrb[24].mxu0 }
0x11e4   :  { %v1362_v30 = vrot.slane %v1355_v32, 2  ;;  %v1363_v33 = vrot.slane %v1355_v32, 3  ;;  %v2119_v34 = vpop.f32.mrb[25].mxu0 }
0x11e5   :  { %v1358_v57 = vpop.f32.mrb[26].mxu0 }
0x11e6   :  { %v1366_v60 = vadd.f32 %v1362_v30, %v2683_v26  ;;  %v1367_v36 = vadd.f32 %v1363_v33, %v2681_v21  ;;  %v2120_v38 = vpop.f32.mrb[27].mxu0 }
0x11e8   :  { %2321 = vtanh.f32 %v1366_v60  ;;  %v1917_v50 = vmul.f32 -1.442695, %v1366_v60  ;;  %v1918_v15 = vmul.f32 -1.442695, %v1367_v36 }
0x11e9   :  { %2323 = vtanh.f32 %v1367_v36 }
0x11f2   :  { %v2322_v40 = vpop.eup %2321 }
0x11f3   :  { %v2324_v41 = vpop.eup %2323  ;;  %1392 = vrot.lane.b32.xlu1 %v2322_v40, %s2506_s5 }
0x11f4   :  { %1394 = vrot.lane.b32.xlu0 %v2324_v41, %s2506_s5 }
0x11f6   :  { %v1487_v42 = vpop.f32.mrb[28].mxu0 }
0x11f7   :  { %v1488_v10 = vadd.f32 %v2995_v43, %v1487_v42  ;;  %v2131_v44 = vpop.f32.mrb[29].mxu0 }
0x11f8   :  { %v1490_v45 = vpop.f32.mrb[30].mxu0 }
0x11f9   :  { %2325 = vtanh.f32 %v1488_v10  ;;  %v2132_v46 = vpop.f32.mrb[31].mxu0  ;;  %v1920_v54 = vmul.f32 -1.442695, %v1488_v10 }
0x11fa   :  { %2327 = vpow2.f32 %v1917_v50 }
0x11fb   :  { %2329 = vpow2.f32 %v1918_v15 }
0x1203   :  { %v2326_v37 = vpop.eup %2325 }
0x1204   :  { %1502 = vrot.lane.b32.xlu1 %v2326_v37, %s2506_s5  ;;  %v2328_v51 = vpop.eup %2327 }
0x1205   :  { %v2330_v53 = vpop.eup %2329  ;;  %v1374_v31 = vadd.f32 1.0, %v2328_v51 }
0x1206   :  { %v1375_v55 = vadd.f32 1.0, %v2330_v53 }
0x1207   :  { %2331 = vrcp.f32 %v1374_v31 }
0x1208   :  { %2333 = vpow2.f32 %v1920_v54 }
0x1209   :  { %2335 = vrcp.f32 %v1375_v55 }
0x1211   :  { %v2332_v56 = vpop.eup %2331 }
0x1212   :  { %v2334_v59 = vpop.eup %2333  ;;  %v1388_v14 = vmul.f32 %v2332_v56, %v1384_v11 }
0x1213   :  { %v2336_v63 = vpop.eup %2335  ;;  %v1496_v39 = vadd.f32 1.0, %v2334_v59 }
0x1214   :  { %v1389_v4 = vmul.f32 %v2336_v63, %v1385_v12 }
0x1215   :  { %2337 = vrcp.f32 %v1496_v39 }
0x121f   :  { %v2338_v5 = vpop.eup %2337 }
0x1220   :  { %v1500_v47 = vmul.f32 %v2338_v5, %v2957_v29 }
0x1265   :  { %v1393_v62 = vpop.permute.xlu1 %1392 }
0x1266   :  { %v1395_v35 = vpop.permute.xlu0 %1394  ;;  %v1398_v1 = vmul.f32 %v2332_v56, %v1393_v62 }
0x1267   :  { %v1399_v3 = vmul.f32 %v2336_v63, %v1395_v35 }
0x1268   :  { %1402 = vrot.lane.b32.xlu0 %v1398_v1, %s2498_s29 }
0x1269   :  { %1404 = vrot.lane.b32.xlu1 %v1399_v3, %s2498_s29 }
0x1276   :  { %v1503_v8 = vpop.permute.xlu1 %1502 }
0x1277   :  { %v1505_v9 = vmul.f32 %v2338_v5, %v1503_v8 }
0x1279   :  { %1507 = vrot.lane.b32.xlu0 %v1505_v9, %s2498_s29 }
0x12da   :  { %v1403_v7 = vpop.permute.xlu0 %1402 }
0x12db   :  { %v3004_v49 = vadd.f32 %v1403_v7, %v1388_v14  ;;  %v1405_v52 = vpop.permute.xlu1 %1404 }
0x12dc   :  { %v3006_v13 = vadd.f32 %v1405_v52, %v1389_v4 }
0x12dd   :  { %2339 = vtanh.f32 %v3004_v49 }
0x12de   :  { %2341 = vtanh.f32 %v3006_v13 }
0x12e7   :  { %v2340_v16 = vpop.eup %2339 }
0x12e8   :  { %v2342_v17 = vpop.eup %2341  ;;  %1414 = vrot.lane.b32.xlu1 %v2340_v16, %s2506_s5 }
0x12e9   :  { %1416 = vrot.lane.b32.xlu0 %v2342_v17, %s2506_s5 }
0x12eb   :  { %v1508_v48 = vpop.permute.xlu0 %1507 }
0x12ec   :  { %v3013_v18 = vadd.f32 %v1508_v48, %v1500_v47 }
0x12ee   :  { %2343 = vtanh.f32 %v3013_v18 }
0x12f8   :  { %v2344_v19 = vpop.eup %2343 }
0x12f9   :  { %1513 = vrot.lane.b32.xlu1 %v2344_v19, %s2506_s5  ;;  %v1595_v19 = vrot.slane %v3006_v13, 7 }
0x135a   :  { %v1415_v20 = vpop.permute.xlu1 %1414 }
0x135b   :  { %v1420_v22 = vmul.f32 %v2332_v56, %v1415_v20  ;;  %v1417_v23 = vpop.permute.xlu0 %1416 }
0x135c   :  { %v1421_v24 = vmul.f32 %v2336_v63, %v1417_v23  ;;  %v1594_v23 = vrot.slane %v3004_v49, 7 }
0x135d   :  { %v1422_v25 = vpack.c.bf16 %v1420_v22, %v1420_v22 }
0x135e   :  { %v1423_v27 = vpack.c.bf16 %v1421_v24, %v1421_v24 }
0x135f   :  { %v1520_v28 = vunpack.c.l.b16 %v1422_v25 }
0x1360   :  { %v1521_v32 = vunpack.c.l.b16 %v1423_v27 }
0x1361   :  { %v1522_v30 = vrot.slane %v1520_v28, 6 }
0x1362   :  { %v1523_v33 = vrot.slane %v1521_v32, 5  ;;  %v1634_v29 = vrot.slane %v1521_v32, 7 }
0x1364   :  { %v1524_v34 = vsel %vm306_vm4, %v1523_v33, %v1522_v30  ;;  %v1636_v57 = vsel %vm1635_vm11, %v1634_v29, %v1520_v28 }
0x1365   :  { %v1525_v60 = vpack.c.b16 %v1524_v34, %v1524_v34  ;;  %v1637_v36 = vpack.c.b16 %v1636_v57, %v1636_v57 }
0x1367   :  { %1526 = vrot.lane.b32.xlu0 %v1525_v60, %s2498_s29  ;;  %1638 = vrot.lane.b32.xlu1 %v1637_v36, %s2498_s29 }
0x136b   :  { %v1514_v38 = vpop.permute.xlu1 %1513 }
0x136c   :  { %v1516_v40 = vmul.f32 %v2338_v5, %v1514_v38 }
0x136e   :  { %v1517_v41 = vpack.c.bf16 %v1516_v40, %v1516_v40 }
0x1370   :  { %v1641_v42 = vrot.slane %v1517_v41, 5 }
0x1372   :  { %1642 = vrot.lane.b32.xlu0 %v1641_v42, %s2506_s5 }
0x13d9   :  { %v1527_v10 = vpop.permute.xlu0 %1526  ;;  %v1639_v44 = vpop.permute.xlu1 %1638 }
0x13da   :  { %2138 = vmatmul.mubr.msk.bf16.vlgmr.msra.gmra.mrb[24].mxu1 %vm193_vm3, %v1527_v10 }
0x13db   :  { %2142 = vmatpush3.bf16.msra.mxu1 %v2707_v58  ;;  %2149 = vmatprep.mubr.msk.bf16.mxu1 %vm2505_vm0, %v2504_v0 }
0x13dc   :  { %2143 = vmatprep.subr.bf16.mxu1 %v2504_v0 }
0x13df   :  { %2144 = vmatpush3.bf16.msra.mxu1 %v2713_v61 }
0x13e0   :  { %2145 = vmatprep.subr.bf16.mxu1 %v2504_v0 }
0x13e3   :  { %2146 = vmatpush3.bf16.msra.mxu1 %v2718_v2 }
0x13e4   :  { %2147 = vmatprep.subr.bf16.mxu1 %v2504_v0  ;;  %v1643_v45 = vpop.permute.xlu0 %1642 }
0x13e5   :  { %v1646_v46 = vsel %vm193_vm3, %v1639_v44, %v1643_v45 }
0x13e6   :  { %v1648_v37 = vrot.slane %v1646_v46, 3 }
0x13e7   :  { %2148 = vmatpush3.bf16.msra.mxu1 %v2723_v6 }
0x13e8   :  { %2165 = vmatprep.subr.bf16.mxu1 %v2504_v0 }
0x13ea   :  { %2150 = vmatmul.mubr.msk.bf16.vlgmr.msra.gmra.mrb[28].mxu1 %vm421_vm5, %v1648_v37 }
0x13eb   :  { %2169 = vmatprep.mubr.msk.bf16.mxu1 %vm2505_vm0, %v2504_v0 }
0x14ad   :  { %v1565_v58 = vpop.f32.mrb[24].mxu1 }
0x14ae   :  { %v1573_v61 = vrot.slane %v1565_v58, 2  ;;  %v2139_v50 = vpop.f32.mrb[25].mxu1  ;;  %v1572_v2 = vrot.slane %v1565_v58, 1 }
0x14af   :  { %v1568_v15 = vpop.f32.mrb[26].mxu1 }
0x14b0   :  { %v1577_v51 = vadd.f32 %v1573_v61, %v2681_v21  ;;  %v2140_v53 = vpop.f32.mrb[27].mxu1  ;;  %v1576_v31 = vadd.f32 %v1572_v2, %v2683_v26 }
0x14b2   :  { %2345 = vtanh.f32 %v1577_v51  ;;  %v1923_v21 = vmul.f32 -1.442695, %v1577_v51  ;;  %v1922_v26 = vmul.f32 -1.442695, %v1576_v31 }
0x14b3   :  { %2347 = vtanh.f32 %v1576_v31 }
0x14bc   :  { %v2346_v6 = vpop.eup %2345 }
0x14bd   :  { %v1686_v54 = vpop.f32.mrb[28].mxu1  ;;  %1604 = vrot.lane.b32.xlu1 %v2346_v6, %s2506_s5  ;;  %v2348_v63 = vpop.eup %2347 }
0x14be   :  { %v1687_v55 = vadd.f32 %v2995_v43, %v1686_v54  ;;  %v2151_v56 = vpop.f32.mrb[29].mxu1 }
0x14bf   :  { %v1689_v59 = vpop.f32.mrb[30].mxu1 }
0x14c0   :  { %2349 = vtanh.f32 %v1687_v55  ;;  %v2152_v62 = vpop.f32.mrb[31].mxu1  ;;  %v1925_v1 = vmul.f32 -1.442695, %v1687_v55 }
0x14c1   :  { %1602 = vrot.lane.b32.xlu1 %v2348_v63, %s2506_s5  ;;  %2351 = vpow2.f32 %v1923_v21 }
0x14c2   :  { %2353 = vpow2.f32 %v1922_v26 }
0x14c3   :  { %2355 = vpow2.f32 %v1925_v1 }
0x14ca   :  { %v2350_v35 = vpop.eup %2349 }
0x14cb   :  { %1701 = vrot.lane.b32.xlu0 %v2350_v35, %s2506_s5  ;;  %v2352_v3 = vpop.eup %2351 }
0x14cc   :  { %v1585_v39 = vadd.f32 1.0, %v2352_v3  ;;  %v2354_v5 = vpop.eup %2353 }
0x14cd   :  { %v1584_v8 = vadd.f32 1.0, %v2354_v5  ;;  %v2356_v9 = vpop.eup %2355 }
0x14ce   :  { %2357 = vrcp.f32 %v1585_v39  ;;  %v1695_v11 = vadd.f32 1.0, %v2356_v9 }
0x14cf   :  { %2359 = vrcp.f32 %v1584_v8 }
0x14d0   :  { %2361 = vrcp.f32 %v1695_v11 }
0x14d8   :  { %v2358_v12 = vpop.eup %2357 }
0x14d9   :  { %v2360_v4 = vpop.eup %2359  ;;  %v1599_v20 = vmul.f32 %v2358_v12, %v1595_v19 }
0x14da   :  { %v2362_v17 = vpop.eup %2361  ;;  %v1598_v25 = vmul.f32 %v2360_v4, %v1594_v23  ;;  %v1928_v23 = vld [vmem:[%s3099_s10] ss:$0 sm:$0xff] }
0x14db   :  { %v1699_v32 = vmul.f32 %v2362_v17, %v3013_v18 }
0x152f   :  { %v1605_v14 = vpop.permute.xlu1 %1604 }
0x1530   :  { %v1609_v7 = vmul.f32 %v2358_v12, %v1605_v14  ;;  %v113_v14 = vld [vmem:[%s3098_s9] sm:$0xff] }
0x1532   :  { %1614 = vrot.lane.b32.xlu0 %v1609_v7, %s2498_s29  ;;  %v114_v7 = vld [vmem:[%s3098_s9 + $0x8] sm:$0xff] }
0x1533   :  { %v1603_v52 = vpop.permute.xlu1 %1602 }
0x1534   :  { %v1608_v16 = vmul.f32 %v2360_v4, %v1603_v52  ;;  %v117_v52 = vpack.c.bf16 %v114_v7, %v113_v14 }
0x1536   :  { %1612 = vrot.lane.b32.xlu0 %v1608_v16, %s2498_s29  ;;  %v116_v16 = vld [vmem:[%s3098_s9 + $0x18] sm:$0xff]  ;;  %2166 = vmatpush3.bf16.msra.mxu1 %v117_v52 }
0x1537   :  { %2167 = vmatprep.subr.bf16.mxu1 %v2504_v0 }
0x153d   :  { %v1702_v47 = vpop.permute.xlu0 %1701 }
0x153e   :  { %v1704_v48 = vmul.f32 %v2362_v17, %v1702_v47 }
0x1540   :  { %1706 = vrot.lane.b32.xlu1 %v1704_v48, %s2498_s29 }
0x15a4   :  { %v1615_v22 = vpop.permute.xlu0 %1614 }
0x15a5   :  { %v1619_v24 = vadd.f32 %v1615_v22, %v1599_v20 }
0x15a7   :  { %2363 = vtanh.f32 %v1619_v24 }
0x15a8   :  { %v1613_v27 = vpop.permute.xlu0 %1612 }
0x15a9   :  { %v1618_v28 = vadd.f32 %v1613_v27, %v1598_v25 }
0x15ab   :  { %2365 = vtanh.f32 %v1618_v28 }
0x15b1   :  { %v2364_v30 = vpop.eup %2363 }
0x15b2   :  { %v1707_v33 = vpop.permute.xlu1 %1706  ;;  %1626 = vrot.lane.b32.xlu1 %v2364_v30, %s2506_s5 }
0x15b3   :  { %v1709_v29 = vadd.f32 %v1707_v33, %v1699_v32 }
0x15b5   :  { %2367 = vtanh.f32 %v1709_v29  ;;  %v2366_v34 = vpop.eup %2365 }
0x15b6   :  { %1624 = vrot.lane.b32.xlu1 %v2366_v34, %s2506_s5 }
0x15bf   :  { %v2368_v13 = vpop.eup %2367 }
0x15c0   :  { %1712 = vrot.lane.b32.xlu0 %v2368_v13, %s2506_s5 }
0x1624   :  { %v1627_v49 = vpop.permute.xlu1 %1626 }
0x1625   :  { %v1631_v57 = vmul.f32 %v2358_v12, %v1627_v49 }
0x1627   :  { %v1633_v60 = vpack.c.bf16 %v1631_v57, %v1631_v57 }
0x1628   :  { %v1625_v36 = vpop.permute.xlu1 %1624 }
0x1629   :  { %v1720_v38 = vunpack.c.l.b16 %v1633_v60  ;;  %v1630_v40 = vmul.f32 %v2360_v4, %v1625_v36  ;;  %v115_v4 = vld [vmem:[%s3098_s9 + $0x10] sm:$0xff]  ;;  %s2507_s9 = smov [#allocation10]  }
0x162a   :  { %s1874_s19 = sshll.u32 %s2507_s9, 4  ;;  %s1875_s19 = int_to_ptr.vmem [resolvable:$true] %s1874_s19 }
0x162b   :  { %v1632_v41 = vpack.c.bf16 %v1630_v40, %v1630_v40  ;;  %v1721_v18 = vrot.slane %v1720_v38, 7  ;;  %s2466_s21 = scalar_lea.vmem %s1875_s19, 32  ;;  %p2471_p5 = scmp.lt.s32.totalorder %s1875_s19, %s1875_s19 }
0x162c   :  { %p2467_p4 = scmp.ne.s32.totalorder %s1875_s19, %s2466_s21  ;;  %p2472_p6 = scmp.lt.s32.totalorder %s2466_s21, %s2466_s21 }
0x162d   :  { %v1719_v42 = vunpack.c.l.b16 %v1632_v41 }
0x162e   :  { %p2473_p7 = por %p2472_p6, %p2471_p5 }
0x162f   :  { %v1722_v10 = vpack.c.b16 %v1721_v18, %v1719_v42 }
0x1630   :  { %p2474_p8 = pnand %p2473_p7, %p2467_p4 }
0x1631   :  { %1723 = vrot.lane.b32.xlu0 %v1722_v10, %s2498_s29 }
0x1632   :  { %v1713_v44 = vpop.permute.xlu0 %1712 }
0x1633   :  { %v1715_v45 = vmul.f32 %v2362_v17, %v1713_v44  ;;  %v118_v17 = vpack.c.bf16 %v116_v16, %v115_v4 }
0x1635   :  { %v1716_v46 = vpack.c.bf16 %v1715_v45, %v1715_v45  ;;  %2168 = vmatpush3.bf16.msra.mxu1 %v118_v17 }
0x1637   :  { %v1726_v37 = vshrl.u32 %v1716_v46, 16  ;;  %v1729_v58 = vshll.u32 %v1716_v46, 16 }
0x1639   :  { %v1728_v61 = vrot.slane %v1726_v37, 4  ;;  %v1731_v50 = vrot.slane %v1729_v58, 5 }
0x163b   :  { %v1732_v2 = vor.u32 %v1731_v50, %v1728_v61 }
0x163d   :  { %1733 = vrot.lane.b32.xlu1 %v1732_v2, %s2506_s5 }
0x16a3   :  { %v1724_v15 = vpop.permute.xlu0 %1723 }
0x16af   :  { %v1734_v51 = vpop.permute.xlu1 %1733 }
0x16b0   :  { %v1737_v53 = vsel %vm193_vm3, %v1724_v15, %v1734_v51 }
0x16b1   :  { %v1738_v31 = vshrl.u32 %v1737_v53, 16  ;;  %v1741_v6 = vshll.u32 %v1737_v53, 16 }
0x16b3   :  { %v1740_v54 = vrot.slane %v1738_v31, 3  ;;  %v1743_v55 = vrot.slane %v1741_v6, 4 }
0x16b5   :  { %v1744_v56 = vor.u32 %v1743_v55, %v1740_v54 }
0x16b7   :  { %2162 = vmatmul.mubr.msk.bf16.vlgmr.msra.gmra.mrb[32].mxu0 %vm421_vm5, %v1744_v56 }
0x178a   :  { %v1782_v59 = vpop.f32.mrb[32].mxu0 }
0x178b   :  { %v1783_v62 = vadd.f32 %v2995_v43, %v1782_v59  ;;  %v2163_v63 = vpop.f32.mrb[33].mxu0 }
0x178c   :  { %v1785_v35 = vpop.f32.mrb[34].mxu0 }
0x178d   :  { %2369 = vtanh.f32 %v1783_v62  ;;  %v2164_v21 = vpop.f32.mrb[35].mxu0  ;;  %v1927_v1 = vmul.f32 -1.442695, %v1783_v62 }
0x178f   :  { %2371 = vpow2.f32 %v1927_v1 }
0x1797   :  { %v2370_v26 = vpop.eup %2369 }
0x1798   :  { %1797 = vrot.lane.b32.xlu0 %v2370_v26, %s2506_s5 }
0x1799   :  { %v2372_v3 = vpop.eup %2371 }
0x179a   :  { %v1791_v39 = vadd.f32 1.0, %v2372_v3 }
0x179c   :  { %2373 = vrcp.f32 %v1791_v39 }
0x17a6   :  { %v2374_v5 = vpop.eup %2373 }
0x17a7   :  { %v1795_v11 = vmul.f32 %v2374_v5, %v1709_v29 }
0x180a   :  { %v1798_v8 = vpop.permute.xlu0 %1797 }
0x180b   :  { %v1800_v9 = vmul.f32 %v2374_v5, %v1798_v8 }
0x180d   :  { %1802 = vrot.lane.b32.xlu1 %v1800_v9, %s2498_s29 }
0x187f   :  { %v1803_v12 = vpop.permute.xlu1 %1802 }
0x1880   :  { %v1805_v43 = vadd.f32 %v1803_v12, %v1795_v11 }
0x1882   :  { %2375 = vtanh.f32 %v1805_v43 }
0x188c   :  { %v2376_v47 = vpop.eup %2375 }
0x188d   :  { %1808 = vrot.lane.b32.xlu0 %v2376_v47, %s2506_s5 }
0x18ff   :  { %v1809_v48 = vpop.permute.xlu0 %1808 }
0x1900   :  { %v1811_v19 = vmul.f32 %v2374_v5, %v1809_v48 }
0x1902   :  { %v1812_v20 = vpack.c.bf16 %v1811_v19, %v1811_v19 }
0x1904   :  { %1821 = vrot.lane.b32.xlu1 %v1812_v20, %s2498_s29 }
0x1976   :  { %v1822_v22 = vpop.permute.xlu1 %1821 }
0x1977   :  { %2170 = vmatmul.mubr.msk.bf16.vlgmr.msra.gmra.mrb[32].mxu1 %vm193_vm3, %v1822_v22 }
0x1a4a   :  { %v1860_v24 = vpop.f32.mrb[32].mxu1 }
0x1a4b   :  { %v1861_v0 = vadd.f32 %v1928_v23, %v1860_v24  ;;  %v2171_v25 = vpop.f32.mrb[33].mxu1 }
0x1a4c   :  { %v1863_v27 = vpop.f32.mrb[34].mxu1 }
0x1a4d   :  { %v2172_v28 = vpop.f32.mrb[35].mxu1  ;;  %1867 = vst.msk [vmem:[#allocation10] sm:$0x3] %vm1866_vm12, %v1861_v0 }
0x1a4e   :  { %2477 = shalt.err (!%p2474_p8)
}
0x1a4f   :  { %s2478_s10 = scalar_lea.hbm %s3100_s11, 32 }
0x1a50   :  { %p2479_p9 = scmp.ne.s32.totalorder %s3100_s11, %s2478_s10  ;;  %p2482_p10 = scmp.lt.u32.totalorder %s2478_s10, %s3100_s11 }
0x1a52   :  { %p2484_p11 = pnand %p2482_p10, %p2479_p9 }
0x1a54   :  { %2487 = shalt.err (!%p2484_p11)
}
0x1a55   :  { %1877 = dma.vmem_to_hbm [thread:$0]  %s1875_s19, 32, %s3100_s11, [#allocation4]  }
0x1a56   :  { %2494 = dma.done.wait [#allocation4], 32  }
0x1a57   :  { %2495 = vsyncadd [#allocation4], 4294967264 }
0x1a58   :  { %1881 = vsyncpa [#allocation3], 1 }
0x1a59   :  { %1882 = vsyncpa [#allocation6], 1 }
0x1a5a   :  { %1883 = vsyncpa [#allocation9], 1 }
0x1a5b   :  { %1884 = vsyncpa [#allocation4], 1 }

</bundles_post_ra>
